<compile_context>
chip_gen: v5e
topology: v5e:2x2
jax: 0.10.0
libtpu: 0.0.40
codegen_flags: <defaults>
</compile_context>

<pallas_src>
import functools

import jax
import jax.numpy as jnp
from jax.experimental import pallas as pl
from jax.experimental.pallas import tpu as pltpu

IN_FEATS = 4        # 3 (h) + 1 (z)
HIDDEN = 256
OUT_TRUE = 3
OUT_ROWS = 8        # final layer padded to 8 sublane rows (true width 3)


def _round_up(x, m):
    return ((x + m - 1) // m) * m


def _mlp_t_kernel(x_ref, w1_ref, b1_ref, w2_ref, b2_ref, w3_ref, b3_ref, o_ref):
    """Transposed MLP: activations are (features, TM); batch lives on the lane axis."""
    xT = x_ref[...]                      # (4, TM)   f32
    w1 = w1_ref[...]                     # (256, 4)  f32 (PyTorch (out, in) layout)

    # --- Layer 1: K=4 "matmul" as 4 VPU broadcast FMAs (MXU would be <2% utilized).
    h1 = b1_ref[...] + w1[:, 0:1] * xT[0:1, :]
    h1 = h1 + w1[:, 1:2] * xT[1:2, :]
    h1 = h1 + w1[:, 2:3] * xT[2:3, :]
    h1 = h1 + w1[:, 3:4] * xT[3:4, :]
    h1 = jnp.maximum(h1, 0.0).astype(jnp.bfloat16)        # (256, TM)

    # --- Layer 2: 256x256 bf16 MXU matmul, f32 accumulation.
    h2 = jnp.dot(w2_ref[...], h1,
                 preferred_element_type=jnp.float32) + b2_ref[...]
    h2 = jnp.maximum(h2, 0.0).astype(jnp.bfloat16)        # (256, TM)

    # --- Layer 3: (8, 256) @ (256, TM); rows 3..7 of w3/b3 are zero padding.
    out = jnp.dot(w3_ref[...], h2,
                  preferred_element_type=jnp.float32) + b3_ref[...]
    o_ref[...] = out.astype(o_ref.dtype)                  # (8, TM) lane-dense store


@functools.partial(jax.jit, static_argnums=(3,))
def _net_g_jit(h, z, kp, tm):
    n = h.shape[0]

    # Keep >= 2 grid steps where possible (v7x has 2 TCs under "parallel"),
    # lane tile always a multiple of 128.
    half = _round_up(max((n + 1) // 2, 128), 128)
    tm_eff = max(128, min(_round_up(tm, 128), half))
    n_pad = _round_up(n, tm_eff)
    grid = (n_pad // tm_eff,)

    # (N,3)+(N,1) -> (4, N_pad): one lane-dense input tile per step (16 B/row).
    xT = jnp.concatenate([h, z], axis=1).T
    if n_pad != n:
        xT = jnp.pad(xT, ((0, 0), (0, n_pad - n)))

    flops = 2 * n_pad * (IN_FEATS * HIDDEN + HIDDEN * HIDDEN + HIDDEN * OUT_ROWS)
    weight_bytes = (HIDDEN * IN_FEATS * 4 + HIDDEN * 4        # w1, b1 (f32)
                    + HIDDEN * HIDDEN * 2 + HIDDEN * 4        # w2 (bf16), b2
                    + OUT_ROWS * HIDDEN * 2 + OUT_ROWS * 4)   # w3 (bf16), b3
    bytes_accessed = n_pad * IN_FEATS * 4 + n_pad * OUT_ROWS * 4 + weight_bytes

    out_t = pl.pallas_call(
        _mlp_t_kernel,
        out_shape=jax.ShapeDtypeStruct((OUT_ROWS, n_pad), jnp.float32),
        grid=grid,
        in_specs=[
            pl.BlockSpec((IN_FEATS, tm_eff), lambda i: (0, i)),   # x^T tile
            pl.BlockSpec((HIDDEN, IN_FEATS), lambda i: (0, 0)),   # w1 (VMEM-resident)
            pl.BlockSpec((HIDDEN, 1), lambda i: (0, 0)),          # b1
            pl.BlockSpec((HIDDEN, HIDDEN), lambda i: (0, 0)),     # w2 (bf16)
            pl.BlockSpec((HIDDEN, 1), lambda i: (0, 0)),          # b2
            pl.BlockSpec((OUT_ROWS, HIDDEN), lambda i: (0, 0)),   # w3 padded (bf16)
            pl.BlockSpec((OUT_ROWS, 1), lambda i: (0, 0)),        # b3 padded
        ],
        out_specs=pl.BlockSpec((OUT_ROWS, tm_eff), lambda i: (0, i)),
        compiler_params=pltpu.CompilerParams(
            dimension_semantics=("parallel",),
            vmem_limit_bytes=32 * 1024 * 1024,
        ),
        cost_estimate=pl.CostEstimate(
            flops=flops, transcendentals=0, bytes_accessed=bytes_accessed),
    )(xT, kp["w1"], kp["b1"], kp["w2"], kp["b2"], kp["w3"], kp["b3"])

    # (8, N_pad) -> (N, 3): tiny (12 B/row) slice+transpose, fused in this jit.
    return out_t[:OUT_TRUE, :n].T


def net_g_forward(h, z, kernel_params, *, tm=2048):
    """h: (N, 3), z: (N, 1) -> (N, 3). kernel_params from prepare_kernel_params()."""
    return _net_g_jit(h, z, kernel_params, tm)


def init_params(key):
    """Deterministic init, PyTorch orientation: weights (out, in), biases (out,)."""
    k1, k2, k3, k4, k5, k6 = jax.random.split(key, 6)
    return {
        "w1": jax.random.normal(k1, (HIDDEN, IN_FEATS), jnp.float32) * 0.1,
        "b1": jax.random.normal(k2, (HIDDEN,), jnp.float32) * 0.01,
        "w2": jax.random.normal(k3, (HIDDEN, HIDDEN), jnp.float32) * 0.05,
        "b2": jax.random.normal(k4, (HIDDEN,), jnp.float32) * 0.01,
        "w3": jax.random.normal(k5, (OUT_TRUE, HIDDEN), jnp.float32) * 0.05,
        "b3": jax.random.normal(k6, (OUT_TRUE,), jnp.float32) * 0.01,
    }


def prepare_kernel_params(params):
    """One-time kernel-ready weight prep (bf16 casts, padding, bias reshapes)."""
    w3_pad = jnp.zeros((OUT_ROWS, HIDDEN), jnp.bfloat16)
    w3_pad = w3_pad.at[:OUT_TRUE, :].set(params["w3"].astype(jnp.bfloat16))
    b3_pad = jnp.zeros((OUT_ROWS, 1), jnp.float32)
    b3_pad = b3_pad.at[:OUT_TRUE, 0].set(params["b3"])
    return {
        "w1": params["w1"].astype(jnp.float32),                      # (256, 4)
        "b1": params["b1"].reshape(HIDDEN, 1).astype(jnp.float32),   # (256, 1)
        "w2": params["w2"].astype(jnp.bfloat16),                     # (256, 256)
        "b2": params["b2"].reshape(HIDDEN, 1).astype(jnp.float32),   # (256, 1)
        "w3": w3_pad,                                                # (8, 256)
        "b3": b3_pad,                                                # (8, 1)
    }


def _reference_forward(h, z, params):
    """Pure-JAX f32 reference (matches the PyTorch forward)."""
    x = jnp.concatenate([h, z], axis=1)
    x = jnp.maximum(x @ params["w1"].T + params["b1"], 0.0)
    x = jnp.maximum(x @ params["w2"].T + params["b2"], 0.0)
    return x @ params["w3"].T + params["b3"]


if __name__ == "__main__":
    key = jax.random.PRNGKey(0)
    kparam, kh, kz = jax.random.split(key, 3)

    params = init_params(kparam)
    kernel_params = prepare_kernel_params(params)   # one-time weight prep

    N = 300  # ragged batch: exercises lane padding and a 2-step "parallel" grid
    h = jax.random.normal(kh, (N, 3), jnp.float32)
    z = jax.random.normal(kz, (N, 1), jnp.float32)

    out = jax.block_until_ready(net_g_forward(h, z, kernel_params))

    ref = _reference_forward(h, z, params)
    assert out.shape == (N, OUT_TRUE)
    # Layers 2/3 use bf16 operands with f32 accumulation -> relaxed tolerance.
    assert jnp.allclose(out, ref, atol=2e-2, rtol=2e-2), "mismatch vs reference"

    print("KERNEL_OK")
</pallas_src>

<mosaic_0001>
module attributes {stable_mosaic.version = 11 : i64} {
  func.func @_mlp_t_kernel(%arg0: i32, %arg1: memref<4x256xf32, #tpu.memory_space<vmem>>, %arg2: memref<256x4xf32, #tpu.memory_space<vmem>>, %arg3: memref<256x1xf32, #tpu.memory_space<vmem>>, %arg4: memref<256x256xbf16, #tpu.memory_space<vmem>>, %arg5: memref<256x1xf32, #tpu.memory_space<vmem>>, %arg6: memref<8x256xbf16, #tpu.memory_space<vmem>>, %arg7: memref<8x1xf32, #tpu.memory_space<vmem>>, %arg8: memref<8x256xf32, #tpu.memory_space<vmem>>) attributes {dimension_semantics = [#tpu.dimension_semantics<parallel>], iteration_bounds = array<i64: 2>, scalar_prefetch = 0 : i64, scratch_operands = 0 : i64, tpu.core_type = #tpu.core_type<tc>, window_params = [{transform_indices = @transform_0, window_bounds = array<i64: 4, 256>}, {pipeline_mode = #tpu.pipeline_mode<synchronous>, transform_indices = @transform_1, window_bounds = array<i64: 256, 4>}, {pipeline_mode = #tpu.pipeline_mode<synchronous>, transform_indices = @transform_2, window_bounds = array<i64: 256, 1>}, {pipeline_mode = #tpu.pipeline_mode<synchronous>, transform_indices = @transform_3, window_bounds = array<i64: 256, 256>}, {pipeline_mode = #tpu.pipeline_mode<synchronous>, transform_indices = @transform_4, window_bounds = array<i64: 256, 1>}, {pipeline_mode = #tpu.pipeline_mode<synchronous>, transform_indices = @transform_5, window_bounds = array<i64: 8, 256>}, {pipeline_mode = #tpu.pipeline_mode<synchronous>, transform_indices = @transform_6, window_bounds = array<i64: 8, 1>}, {transform_indices = @transform_7, window_bounds = array<i64: 8, 256>}]} {
    %c0 = arith.constant 0 : index
    %c0_0 = arith.constant 0 : index
    %0 = vector.load %arg1[%c0, %c0_0] : memref<4x256xf32, #tpu.memory_space<vmem>>, vector<4x256xf32>
    %c0_1 = arith.constant 0 : index
    %c0_2 = arith.constant 0 : index
    %1 = vector.load %arg2[%c0_1, %c0_2] : memref<256x4xf32, #tpu.memory_space<vmem>>, vector<256x4xf32>
    %c0_3 = arith.constant 0 : index
    %c0_4 = arith.constant 0 : index
    %2 = vector.load %arg3[%c0_3, %c0_4] : memref<256x1xf32, #tpu.memory_space<vmem>>, vector<256x1xf32>
    %3 = vector.extract_strided_slice %1 {offsets = [0, 0], sizes = [256, 1], strides = [1, 1]} : vector<256x4xf32> to vector<256x1xf32>
    %4 = vector.extract_strided_slice %0 {offsets = [0, 0], sizes = [1, 256], strides = [1, 1]} : vector<4x256xf32> to vector<1x256xf32>
    %5 = vector.broadcast %3 : vector<256x1xf32> to vector<256x256xf32>
    %6 = vector.broadcast %4 : vector<1x256xf32> to vector<256x256xf32>
    %7 = arith.mulf %5, %6 : vector<256x256xf32>
    %8 = vector.broadcast %2 : vector<256x1xf32> to vector<256x256xf32>
    %9 = arith.addf %8, %7 : vector<256x256xf32>
    %10 = vector.extract_strided_slice %1 {offsets = [0, 1], sizes = [256, 1], strides = [1, 1]} : vector<256x4xf32> to vector<256x1xf32>
    %11 = vector.extract_strided_slice %0 {offsets = [1, 0], sizes = [1, 256], strides = [1, 1]} : vector<4x256xf32> to vector<1x256xf32>
    %12 = vector.broadcast %10 : vector<256x1xf32> to vector<256x256xf32>
    %13 = vector.broadcast %11 : vector<1x256xf32> to vector<256x256xf32>
    %14 = arith.mulf %12, %13 : vector<256x256xf32>
    %15 = arith.addf %9, %14 : vector<256x256xf32>
    %16 = vector.extract_strided_slice %1 {offsets = [0, 2], sizes = [256, 1], strides = [1, 1]} : vector<256x4xf32> to vector<256x1xf32>
    %17 = vector.extract_strided_slice %0 {offsets = [2, 0], sizes = [1, 256], strides = [1, 1]} : vector<4x256xf32> to vector<1x256xf32>
    %18 = vector.broadcast %16 : vector<256x1xf32> to vector<256x256xf32>
    %19 = vector.broadcast %17 : vector<1x256xf32> to vector<256x256xf32>
    %20 = arith.mulf %18, %19 : vector<256x256xf32>
    %21 = arith.addf %15, %20 : vector<256x256xf32>
    %22 = vector.extract_strided_slice %1 {offsets = [0, 3], sizes = [256, 1], strides = [1, 1]} : vector<256x4xf32> to vector<256x1xf32>
    %23 = vector.extract_strided_slice %0 {offsets = [3, 0], sizes = [1, 256], strides = [1, 1]} : vector<4x256xf32> to vector<1x256xf32>
    %24 = vector.broadcast %22 : vector<256x1xf32> to vector<256x256xf32>
    %25 = vector.broadcast %23 : vector<1x256xf32> to vector<256x256xf32>
    %26 = arith.mulf %24, %25 : vector<256x256xf32>
    %27 = arith.addf %21, %26 : vector<256x256xf32>
    %cst = arith.constant 0.000000e+00 : f32
    %28 = vector.broadcast %cst : f32 to vector<256x256xf32>
    %29 = arith.maximumf %27, %28 : vector<256x256xf32>
    %30 = arith.truncf %29 : vector<256x256xf32> to vector<256x256xbf16>
    %c0_5 = arith.constant 0 : index
    %c0_6 = arith.constant 0 : index
    %31 = vector.load %arg4[%c0_5, %c0_6] : memref<256x256xbf16, #tpu.memory_space<vmem>>, vector<256x256xbf16>
    %cst_7 = arith.constant dense<0.000000e+00> : vector<256x256xf32>
    %32 = tpu.matmul %31, %30, %cst_7 {dimension_numbers = #tpu.dot_dimension_numbers<[1], [0], [0], [1], [0, 0, 1, 1], [], []>} : vector<256x256xbf16>, vector<256x256xbf16>, vector<256x256xf32> -> vector<256x256xf32>
    %c0_8 = arith.constant 0 : index
    %c0_9 = arith.constant 0 : index
    %33 = vector.load %arg5[%c0_8, %c0_9] : memref<256x1xf32, #tpu.memory_space<vmem>>, vector<256x1xf32>
    %34 = vector.broadcast %33 : vector<256x1xf32> to vector<256x256xf32>
    %35 = arith.addf %32, %34 : vector<256x256xf32>
    %cst_10 = arith.constant 0.000000e+00 : f32
    %36 = vector.broadcast %cst_10 : f32 to vector<256x256xf32>
    %37 = arith.maximumf %35, %36 : vector<256x256xf32>
    %38 = arith.truncf %37 : vector<256x256xf32> to vector<256x256xbf16>
    %c0_11 = arith.constant 0 : index
    %c0_12 = arith.constant 0 : index
    %39 = vector.load %arg6[%c0_11, %c0_12] : memref<8x256xbf16, #tpu.memory_space<vmem>>, vector<8x256xbf16>
    %cst_13 = arith.constant dense<0.000000e+00> : vector<8x256xf32>
    %40 = tpu.matmul %39, %38, %cst_13 {dimension_numbers = #tpu.dot_dimension_numbers<[1], [0], [0], [1], [0, 0, 1, 1], [], []>} : vector<8x256xbf16>, vector<256x256xbf16>, vector<8x256xf32> -> vector<8x256xf32>
    %c0_14 = arith.constant 0 : index
    %c0_15 = arith.constant 0 : index
    %41 = vector.load %arg7[%c0_14, %c0_15] : memref<8x1xf32, #tpu.memory_space<vmem>>, vector<8x1xf32>
    %42 = vector.broadcast %41 : vector<8x1xf32> to vector<8x256xf32>
    %43 = arith.addf %40, %42 : vector<8x256xf32>
    %c0_16 = arith.constant 0 : index
    %c0_17 = arith.constant 0 : index
    %44 = vector.load %arg8[%c0_16, %c0_17] : memref<8x256xf32, #tpu.memory_space<vmem>>, vector<8x256xf32>
    tpu.vector_store %arg8[%c0_16, %c0_17], %43 {strides = array<i32>} : memref<8x256xf32, #tpu.memory_space<vmem>>, vector<8x256xf32>,
    return
  }
  func.func @transform_0(%arg0: i32) -> (i32, i32) {
    %c0_i32 = arith.constant 0 : i32
    %c0_i32_0 = arith.constant 0 : i32
    return %c0_i32, %arg0 : i32, i32
  }
  func.func @transform_1(%arg0: i32) -> (i32, i32) {
    %c0_i32 = arith.constant 0 : i32
    %c0_i32_0 = arith.constant 0 : i32
    %c0_i32_1 = arith.constant 0 : i32
    return %c0_i32, %c0_i32_0 : i32, i32
  }
  func.func @transform_2(%arg0: i32) -> (i32, i32) {
    %c0_i32 = arith.constant 0 : i32
    %c0_i32_0 = arith.constant 0 : i32
    %c0_i32_1 = arith.constant 0 : i32
    return %c0_i32, %c0_i32_0 : i32, i32
  }
  func.func @transform_3(%arg0: i32) -> (i32, i32) {
    %c0_i32 = arith.constant 0 : i32
    %c0_i32_0 = arith.constant 0 : i32
    %c0_i32_1 = arith.constant 0 : i32
    return %c0_i32, %c0_i32_0 : i32, i32
  }
  func.func @transform_4(%arg0: i32) -> (i32, i32) {
    %c0_i32 = arith.constant 0 : i32
    %c0_i32_0 = arith.constant 0 : i32
    %c0_i32_1 = arith.constant 0 : i32
    return %c0_i32, %c0_i32_0 : i32, i32
  }
  func.func @transform_5(%arg0: i32) -> (i32, i32) {
    %c0_i32 = arith.constant 0 : i32
    %c0_i32_0 = arith.constant 0 : i32
    %c0_i32_1 = arith.constant 0 : i32
    return %c0_i32, %c0_i32_0 : i32, i32
  }
  func.func @transform_6(%arg0: i32) -> (i32, i32) {
    %c0_i32 = arith.constant 0 : i32
    %c0_i32_0 = arith.constant 0 : i32
    %c0_i32_1 = arith.constant 0 : i32
    return %c0_i32, %c0_i32_0 : i32, i32
  }
  func.func @transform_7(%arg0: i32) -> (i32, i32) {
    %c0_i32 = arith.constant 0 : i32
    %c0_i32_0 = arith.constant 0 : i32
    return %c0_i32, %arg0 : i32, i32
  }
}

</mosaic_0001>

<bundles_post_ra>
// kernel: _net_g_jit.1
= control target key start
LH: loop header
LB: loop body
LE: loop exit
PB: predicated region body
PF: predicated region fallthrough
CT: control target
= control target key end

     0   :  { %s2945_s24 = smov 0   ;;  %s4767_s0 = inlined_call_operand.vmem [shape: f32[4,512], index: 0, kind: input, shape index: {}]   ;;  %s4768_s1 = inlined_call_operand.vmem [shape: f32[256,4], index: 1, kind: input, shape index: {}]   ;;  %s4769_s2 = inlined_call_operand.vmem [shape: f32[256,1], index: 2, kind: input, shape index: {}]   ;;  %s4770_s3 = inlined_call_operand.vmem [shape: bf16[256,256], index: 3, kind: input, shape index: {}]   ;;  %s4771_s4 = inlined_call_operand.vmem [shape: f32[256,1], index: 4, kind: input, shape index: {}]   ;;  %s4772_s5 = inlined_call_operand.vmem [shape: bf16[8,256], index: 5, kind: input, shape index: {}]   ;;  %s4773_s6 = inlined_call_operand.vmem [shape: f32[8,1], index: 6, kind: input, shape index: {}]   ;;  %s4774_s7 = inlined_call_operand.vmem [shape: f32[8,512], index: 7, kind: output, shape index: {}]  }
   0x1 LB: > { %s2644_s25 = sadd.s32 4294967295, %s2899_s24   ;;  %p2648_p0 = scmp.ge.s32.totalorder %s2899_s24, 1  ;;  %s2899_s24 = sphi %s2945_s24, %s17_s24  }
   0x2   : > { %p238_p1 = scmp.lt.s32.totalorder %s2899_s24, 3 }
   0x4   : > { %p239_p2 = pnand %p2648_p0, %p238_p1 }
   0x6   : > { %242 = sbr.rel (%p239_p2) target bundleno = 1167 (0x48f), region = 48 }
   0xb   : > { %v2956_v0 = vld [vmem:[%s4768_s1 + $0x20] sm:$0xff]  ;;  %v2961_v1 = vld [vmem:[%s4768_s1 + $0x10] sm:$0xff]  ;;  %v4775_v3 = vmov 0   ;;  %v2977_v4 = vld [vmem:[%s4768_s1 + $0x28] sm:$0xff]  ;;  %s2649_s28 = sshll.u32 %s2644_s25, 1 }
   0xc   : > { %v2966_v2 = vld [vmem:[%s4768_s1] sm:$0xff]  ;;  %2829 = vset.pattern.permute.xlu2 %v4775_v3  ;;  %2828 = vset.pattern.permute.xlu1 %v4775_v3  ;;  %v2982_v5 = vld [vmem:[%s4768_s1 + $0x18] sm:$0xff]  ;;  %v2987_v6 = vld [vmem:[%s4768_s1 + $0x8] sm:$0xff]  ;;  %p271_p3 = scmp.lt.s32.totalorder %s2649_s28, 3 }
   0xd   : > { %2827 = vset.pattern.permute.xlu0 %v4775_v3  ;;  %369 = vperm.xlu2 %2829, %v2956_v0   ;;  %v2995_v7 = vld [vmem:[%s4768_s1 + $0x40] sm:$0xff]  ;;  %v3000_v8 = vld [vmem:[%s4768_s1 + $0x38] sm:$0xff]  ;;  %v3005_v9 = vld [vmem:[%s4768_s1 + $0x30] sm:$0xff] }
   0xe   : > { %359 = vperm.xlu1 %2828, %v2961_v1   ;;  %349 = vperm.xlu0 %2827, %v2966_v2   ;;  %v3013_v10 = vld [vmem:[%s4768_s1 + $0x58] sm:$0xff]  ;;  %v3018_v11 = vld [vmem:[%s4768_s1 + $0x50] sm:$0xff]  ;;  %v3023_v12 = vld [vmem:[%s4768_s1 + $0x48] sm:$0xff]  ;;  %s4980_s28 = smov (!%p271_p3, %s2649_s28), 3 }
   0xf   : > { %v3031_v13 = vld [vmem:[%s4768_s1 + $0x70] sm:$0xff]  ;;  %v3036_v14 = vld [vmem:[%s4768_s1 + $0x68] sm:$0xff]  ;;  %v3041_v15 = vld [vmem:[%s4768_s1 + $0x60] sm:$0xff]  ;;  %s2650_s29 = sshll.u32 %s4980_s28, 2  ;;  %s2652_s21 = sshll.u32 %s4980_s28, 3 }
  0x10   : > { %v3049_v16 = vld [vmem:[%s4768_s1 + $0x88] sm:$0xff]  ;;  %v3054_v17 = vld [vmem:[%s4768_s1 + $0x80] sm:$0xff]  ;;  %v3059_v18 = vld [vmem:[%s4768_s1 + $0x78] sm:$0xff]  ;;  %s274_s8 = scalar_lea.vmem %s4767_s0, %s2650_s29  ;;  %s280_s26 = scalar_lea.vmem %s4774_s7, %s2652_s21 }
  0x11   : > { %v3067_v19 = vld [vmem:[%s4768_s1 + $0xa0] sm:$0xff]  ;;  %v3072_v20 = vld [vmem:[%s4768_s1 + $0x98] sm:$0xff]  ;;  %v3077_v21 = vld [vmem:[%s4768_s1 + $0x90] sm:$0xff] }
  0x12   : > { %v3085_v22 = vld [vmem:[%s4768_s1 + $0xb8] sm:$0xff]  ;;  %v3090_v23 = vld [vmem:[%s4768_s1 + $0xb0] sm:$0xff]  ;;  %v3095_v24 = vld [vmem:[%s4768_s1 + $0xa8] sm:$0xff] }
  0x13   : > { %v3103_v25 = vld [vmem:[%s4768_s1 + $0xd0] sm:$0xff]  ;;  %v3108_v26 = vld [vmem:[%s4768_s1 + $0xc8] sm:$0xff]  ;;  %v3113_v27 = vld [vmem:[%s4768_s1 + $0xc0] sm:$0xff] }
  0x14   : > { %v3121_v28 = vld [vmem:[%s4768_s1 + $0xe8] sm:$0xff]  ;;  %v3126_v29 = vld [vmem:[%s4768_s1 + $0xe0] sm:$0xff]  ;;  %v3131_v30 = vld [vmem:[%s4768_s1 + $0xd8] sm:$0xff] }
  0x15   : > { %374 = vperm.xlu2 %2829, %v2977_v4   ;;  %v315_v31 = vld [vmem:[%s4769_s2] sm:$0xff]  ;;  %v3142_v32 = vld [vmem:[%s4768_s1 + $0xf8] sm:$0xff]  ;;  %v3147_v33 = vld [vmem:[%s4768_s1 + $0xf0] sm:$0xff] }
  0x16   : > { %364 = vperm.xlu1 %2828, %v2982_v5   ;;  %354 = vperm.xlu0 %2827, %v2987_v6   ;;  %v318_v34 = vld [vmem:[%s4769_s2 + $0x18] sm:$0xff]  ;;  %v317_v35 = vld [vmem:[%s4769_s2 + $0x10] sm:$0xff]  ;;  %v316_v36 = vld [vmem:[%s4769_s2 + $0x8] sm:$0xff] }
  0x17   : > { %v321_v38 = vld [vmem:[%s4769_s2 + $0x30] sm:$0xff]  ;;  %v320_v39 = vld [vmem:[%s4769_s2 + $0x28] sm:$0xff]  ;;  %v319_v40 = vld [vmem:[%s4769_s2 + $0x20] sm:$0xff] }
  0x18   : > { %v324_v42 = vld [vmem:[%s4769_s2 + $0x48] sm:$0xff]  ;;  %v323_v43 = vld [vmem:[%s4769_s2 + $0x40] sm:$0xff]  ;;  %v322_v44 = vld [vmem:[%s4769_s2 + $0x38] sm:$0xff] }
  0x19   : > { %v327_v46 = vld [vmem:[%s4769_s2 + $0x60] sm:$0xff]  ;;  %v326_v47 = vld [vmem:[%s4769_s2 + $0x58] sm:$0xff]  ;;  %v325_v48 = vld [vmem:[%s4769_s2 + $0x50] sm:$0xff] }
  0x1a   : > { %v330_v52 = vld [vmem:[%s4769_s2 + $0x78] sm:$0xff]  ;;  %v329_v53 = vld [vmem:[%s4769_s2 + $0x70] sm:$0xff]  ;;  %v328_v54 = vld [vmem:[%s4769_s2 + $0x68] sm:$0xff] }
  0x1b   : > { %v333_v58 = vld [vmem:[%s4769_s2 + $0x90] sm:$0xff]  ;;  %v332_v59 = vld [vmem:[%s4769_s2 + $0x88] sm:$0xff]  ;;  %v331_v60 = vld [vmem:[%s4769_s2 + $0x80] sm:$0xff] }
  0x1d   : > { %389 = vperm.xlu2 %2829, %v2995_v7  }
  0x1e   : > { %384 = vperm.xlu1 %2828, %v3000_v8   ;;  %379 = vperm.xlu0 %2827, %v3005_v9  }
  0x25   : > { %404 = vperm.xlu2 %2829, %v3013_v10  }
  0x26   : > { %399 = vperm.xlu1 %2828, %v3018_v11   ;;  %394 = vperm.xlu0 %2827, %v3023_v12  }
  0x2d   : > { %419 = vperm.xlu2 %2829, %v3031_v13  }
  0x2e   : > { %414 = vperm.xlu1 %2828, %v3036_v14   ;;  %409 = vperm.xlu0 %2827, %v3041_v15  }
  0x35   : > { %434 = vperm.xlu2 %2829, %v3049_v16  }
  0x36   : > { %429 = vperm.xlu1 %2828, %v3054_v17   ;;  %424 = vperm.xlu0 %2827, %v3059_v18  }
  0x3d   : > { %449 = vperm.xlu2 %2829, %v3067_v19  }
  0x3e   : > { %444 = vperm.xlu1 %2828, %v3072_v20   ;;  %439 = vperm.xlu0 %2827, %v3077_v21  }
  0x45   : > { %464 = vperm.xlu2 %2829, %v3085_v22  }
  0x46   : > { %459 = vperm.xlu1 %2828, %v3090_v23   ;;  %454 = vperm.xlu0 %2827, %v3095_v24  }
  0x4d   : > { %479 = vperm.xlu2 %2829, %v3103_v25  }
  0x4e   : > { %474 = vperm.xlu1 %2828, %v3108_v26   ;;  %469 = vperm.xlu0 %2827, %v3113_v27  }
  0x55   : > { %494 = vperm.xlu2 %2829, %v3121_v28  }
  0x56   : > { %489 = vperm.xlu1 %2828, %v3126_v29   ;;  %484 = vperm.xlu0 %2827, %v3131_v30  }
  0x5d   : > { %580 = vperm.xlu2 %2829, %v315_v31   ;;  %v336_v31 = vld [vmem:[%s4769_s2 + $0xa8] sm:$0xff] }
  0x5e   : > { %504 = vperm.xlu1 %2828, %v3142_v32   ;;  %499 = vperm.xlu0 %2827, %v3147_v33  }
  0x65   : > { %595 = vperm.xlu2 %2829, %v318_v34   ;;  %v335_v34 = vld [vmem:[%s4769_s2 + $0xa0] sm:$0xff] }
  0x66   : > { %590 = vperm.xlu1 %2828, %v317_v35   ;;  %585 = vperm.xlu0 %2827, %v316_v36   ;;  %v334_v35 = vld [vmem:[%s4769_s2 + $0x98] sm:$0xff] }
  0x67   : > { %v3160_v37 = vpop.permute.xlu2 %369 }
  0x6d   : > { %610 = vperm.xlu2 %2829, %v321_v38  }
  0x6e   : > { %605 = vperm.xlu1 %2828, %v320_v39   ;;  %600 = vperm.xlu0 %2827, %v319_v40   ;;  %v339_v40 = vld [vmem:[%s4769_s2 + $0xc0] sm:$0xff] }
  0x6f   : > { %v3171_v41 = vpop.permute.xlu2 %374 }
  0x70   : > { %4836 = vst [vmem:[#allocation2_spill] sm:$0xff] %v3171_v41 }
  0x75   : > { %625 = vperm.xlu2 %2829, %v324_v42   ;;  %v338_v42 = vld [vmem:[%s4769_s2 + $0xb8] sm:$0xff] }
  0x76   : > { %620 = vperm.xlu1 %2828, %v323_v43   ;;  %615 = vperm.xlu0 %2827, %v322_v44   ;;  %v337_v43 = vld [vmem:[%s4769_s2 + $0xb0] sm:$0xff] }
  0x77   : > { %v3182_v45 = vpop.permute.xlu2 %389 }
  0x78   : > { %4837 = vst [vmem:[#allocation3_spill] sm:$0xff] %v3182_v45 }
  0x7d   : > { %640 = vperm.xlu2 %2829, %v327_v46  }
  0x7e   : > { %635 = vperm.xlu1 %2828, %v326_v47   ;;  %630 = vperm.xlu0 %2827, %v325_v48   ;;  %v342_v48 = vld [vmem:[%s4769_s2 + $0xd8] sm:$0xff] }
  0x7f   : > { %v3193_v49 = vpop.permute.xlu2 %404 }
  0x80   : > { %4838 = vst [vmem:[#allocation4_spill] sm:$0xff] %v3193_v49  ;;  %v3195_v50 = vpop.permute.xlu1 %359  ;;  %v3197_v51 = vpop.permute.xlu0 %349  ;;  %v4807_v49 = vmov 2  }
  0x81   : > { %4839 = vst [vmem:[#allocation5_spill] sm:$0xff] %v3195_v50 }
  0x82   : > { %4840 = vst [vmem:[#allocation6_spill] sm:$0xff] %v3197_v51  ;;  %v4859_v51 = vmov 1  }
  0x85   : > { %655 = vperm.xlu2 %2829, %v330_v52   ;;  %v341_v52 = vld [vmem:[%s4769_s2 + $0xd0] sm:$0xff] }
  0x86   : > { %650 = vperm.xlu1 %2828, %v329_v53   ;;  %645 = vperm.xlu0 %2827, %v328_v54   ;;  %v340_v53 = vld [vmem:[%s4769_s2 + $0xc8] sm:$0xff] }
  0x87   : > { %v3208_v55 = vpop.permute.xlu2 %419 }
  0x88   : > { %v3210_v56 = vpop.permute.xlu1 %364  ;;  %v3212_v57 = vpop.permute.xlu0 %354 }
  0x89   : > { %4841 = vst [vmem:[#allocation7_spill] sm:$0xff] %v3210_v56 }
  0x8d   : > { %670 = vperm.xlu2 %2829, %v333_v58  }
  0x8e   : > { %665 = vperm.xlu1 %2828, %v332_v59   ;;  %660 = vperm.xlu0 %2827, %v331_v60   ;;  %v345_v60 = vld [vmem:[%s4769_s2 + $0xf0] sm:$0xff] }
  0x8f   : > { %v3223_v61 = vpop.permute.xlu2 %434 }
  0x90   : > { %4842 = vst [vmem:[#allocation8_spill] sm:$0xff] %v3223_v61  ;;  %v3225_v62 = vpop.permute.xlu1 %384  ;;  %v3227_v63 = vpop.permute.xlu0 %379 }
  0x91   : > { %4843 = vst [vmem:[#allocation9_spill] sm:$0xff] %v3227_v63  ;;  %v3371_v63 = vld [vmem:[%s274_s8] sm:$0xff] }
  0x95   : > { %685 = vperm.xlu2 %2829, %v336_v31   ;;  %v344_v31 = vld [vmem:[%s4769_s2 + $0xe8] sm:$0xff] }
  0x96   : > { %680 = vperm.xlu1 %2828, %v335_v34   ;;  %675 = vperm.xlu0 %2827, %v334_v35   ;;  %v343_v34 = vld [vmem:[%s4769_s2 + $0xe0] sm:$0xff] }
  0x97   : > { %v3238_v36 = vpop.permute.xlu2 %449 }
  0x98   : > { %4844 = vst [vmem:[#allocation10_spill] sm:$0xff] %v3238_v36  ;;  %v3240_v38 = vpop.permute.xlu1 %399  ;;  %v3242_v39 = vpop.permute.xlu0 %394 }
  0x99   : > { %4845 = vst [vmem:[#allocation11_spill] sm:$0xff] %v3242_v39 }
  0x9d   : > { %700 = vperm.xlu2 %2829, %v339_v40  }
  0x9e   : > { %695 = vperm.xlu1 %2828, %v338_v42   ;;  %690 = vperm.xlu0 %2827, %v337_v43   ;;  %v346_v43 = vld [vmem:[%s4769_s2 + $0xf8] sm:$0xff] }
  0x9f   : > { %v3253_v44 = vpop.permute.xlu2 %464 }
  0xa0   : > { %4846 = vst [vmem:[#allocation12_spill] sm:$0xff] %v3253_v44  ;;  %v3255_v46 = vpop.permute.xlu1 %414  ;;  %v3257_v47 = vpop.permute.xlu0 %409 }
  0xa5   : > { %715 = vperm.xlu2 %2829, %v342_v48   ;;  %v4779_v48 = vmov 1  }
  0xa6   : > { %710 = vperm.xlu1 %2828, %v341_v52   ;;  %705 = vperm.xlu0 %2827, %v340_v53  }
  0xa7   : > { %v3268_v54 = vpop.permute.xlu2 %479 }
  0xa8   : > { %4847 = vst [vmem:[#allocation13_spill] sm:$0xff] %v3268_v54  ;;  %v3270_v58 = vpop.permute.xlu1 %429  ;;  %v3272_v59 = vpop.permute.xlu0 %424 }
  0xad   : > { %730 = vperm.xlu2 %2829, %v345_v60  }
  0xae   : > { %725 = vperm.xlu1 %2828, %v344_v31   ;;  %720 = vperm.xlu0 %2827, %v343_v34   ;;  %v4777_v31 = vmov 3  }
  0xaf   : > { %v3283_v35 = vpop.permute.xlu2 %494 }
  0xb0   : > { %v3285_v40 = vpop.permute.xlu1 %444  ;;  %v3287_v42 = vpop.permute.xlu0 %439 }
  0xb1   : > { %4848 = vst [vmem:[#allocation14_spill] sm:$0xff] %v3287_v42 }
  0xb5   : > { %2831 = vset.pattern.permute.xlu2 %v4779_v48 }
  0xb6   : > { %2830 = vset.pattern.permute.xlu1 %v4779_v48  ;;  %735 = vperm.xlu0 %2827, %v346_v43  }
  0xb7   : > { %807 = vperm.xlu2 %2831, %v2987_v6   ;;  %803 = vperm.xlu1 %2830, %v2966_v2   ;;  %v3296_v52 = vpop.permute.xlu2 %580 }
  0xb8   : > { %4849 = vst [vmem:[#allocation15_spill] sm:$0xff] %v3296_v52  ;;  %v3298_v53 = vpop.permute.xlu1 %459  ;;  %v3300_v60 = vpop.permute.xlu0 %454 }
  0xbe   : > { %2835 = vset.pattern.permute.xlu0 %v4777_v31 }
  0xbf   : > { %819 = vperm.xlu2 %2831, %v2956_v0   ;;  %815 = vperm.xlu1 %2830, %v2982_v5   ;;  %v3305_v34 = vpop.permute.xlu2 %595 }
  0xc0   : > { %4850 = vst [vmem:[#allocation16_spill] sm:$0xff] %v3305_v34  ;;  %1387 = vperm.xlu0 %2835, %v3059_v18   ;;  %v3308_v43 = vpop.permute.xlu1 %474  ;;  %v3310_v2 = vpop.permute.xlu0 %469 }
  0xc1   : > { %4851 = vst [vmem:[#allocation17_spill] sm:$0xff] %v3308_v43  ;;  %v508_v43 = vperm.slane %v3371_v63, 0 }
  0xc2   : > { %4852 = vst [vmem:[#allocation18_spill] sm:$0xff] %v3310_v2 }
  0xc3   : > { %v3384_v39 = vperm.slane %v508_v43, 0 }
  0xc7   : > { %827 = vperm.xlu2 %2831, %v3005_v9   ;;  %823 = vperm.xlu1 %2830, %v2977_v4   ;;  %v3314_v3 = vpop.permute.xlu2 %610 }
  0xc8   : > { %4853 = vst [vmem:[#allocation19_spill] sm:$0xff] %v3314_v3  ;;  %1447 = vperm.xlu0 %2835, %v3147_v33   ;;  %v3317_v31 = vpop.permute.xlu1 %489  ;;  %v485_v0 = vpop.permute.xlu0 %484 }
  0xc9   : > { %4854 = vst [vmem:[#allocation20_spill] sm:$0xff] %v3317_v31  ;;  %v568_v42 = vmul.f32 %v3384_v39, %v485_v0 }
  0xcf   : > { %839 = vperm.xlu2 %2831, %v3023_v12   ;;  %835 = vperm.xlu1 %2830, %v2995_v7   ;;  %v3321_v5 = vpop.permute.xlu2 %625 }
  0xd0   : > { %4855 = vst [vmem:[#allocation21_spill] sm:$0xff] %v3321_v5  ;;  %1443 = vperm.xlu0 %2835, %v3121_v28   ;;  %v3324_v48 = vpop.permute.xlu1 %504  ;;  %v500_v61 = vpop.permute.xlu0 %499 }
  0xd1   : > { %4856 = vst [vmem:[#allocation22_spill] sm:$0xff] %v3324_v48  ;;  %v574_v43 = vmul.f32 %v3384_v39, %v500_v61 }
  0xd7   : > { %851 = vperm.xlu2 %2831, %v3041_v15   ;;  %847 = vperm.xlu1 %2830, %v3013_v10   ;;  %v3328_v34 = vpop.permute.xlu2 %640 }
  0xd8   : > { %4857 = vst [vmem:[#allocation23_spill] sm:$0xff] %v3328_v34  ;;  %1435 = vperm.xlu0 %2835, %v3131_v30   ;;  %v3331_v52 = vpop.permute.xlu1 %590  ;;  %v3333_v56 = vpop.permute.xlu0 %585 }
  0xd9   : > { %4858 = vst [vmem:[#allocation24_spill] sm:$0xff] %v3331_v52 }
  0xdf   : > { %863 = vperm.xlu2 %2831, %v3059_v18   ;;  %859 = vperm.xlu1 %2830, %v3031_v13   ;;  %v3337_v50 = vpop.permute.xlu2 %655 }
  0xe0   : > { %2853 = vset.pattern.permute.xlu0 %v4859_v51  ;;  %v3340_v36 = vpop.permute.xlu1 %605  ;;  %v3342_v44 = vpop.permute.xlu0 %600 }
  0xe1   : > { %4860 = vst [vmem:[#allocation25_spill] sm:$0xff] %v3340_v36  ;;  %811 = vperm.xlu0 %2853, %v2961_v1  }
  0xe7   : > { %875 = vperm.xlu2 %2831, %v3077_v21   ;;  %871 = vperm.xlu1 %2830, %v3049_v16   ;;  %v3349_v52 = vpop.permute.xlu2 %670 }
  0xe8   : > { %4861 = vst [vmem:[#allocation26_spill] sm:$0xff] %v3349_v52  ;;  %v3351_v3 = vpop.permute.xlu1 %620  ;;  %v3353_v41 = vpop.permute.xlu0 %615 }
  0xe9   : > { %4862 = vst [vmem:[#allocation27_spill] sm:$0xff] %v3351_v3  ;;  %831 = vperm.xlu0 %2853, %v3000_v8   ;;  %v509_v3 = vperm.slane %v3371_v63, 4 }
  0xeb   : > { %v3386_v52 = vperm.slane %v509_v3, 0 }
  0xef   : > { %887 = vperm.xlu2 %2831, %v3095_v24   ;;  %883 = vperm.xlu1 %2830, %v3067_v19   ;;  %v3361_v1 = vpop.permute.xlu2 %685 }
  0xf0   : > { %v3363_v36 = vpop.permute.xlu1 %635  ;;  %v3365_v16 = vpop.permute.xlu0 %630 }
  0xf1   : > { %4863 = vst [vmem:[#allocation28_spill] sm:$0xff] %v3363_v36  ;;  %843 = vperm.xlu0 %2853, %v3018_v11   ;;  %v569_v36 = vmul.f32 %v3386_v52, %v485_v0  ;;  %v575_v0 = vmul.f32 %v3386_v52, %v500_v61  ;;  %v931_v61 = vperm.slane %v3371_v63, 5 }
  0xf7   : > { %927 = vperm.xlu2 %2831, %v3142_v32   ;;  %923 = vperm.xlu1 %2830, %v3147_v33   ;;  %v3375_v24 = vpop.permute.xlu2 %700 }
  0xf8   : > { %4864 = vst [vmem:[#allocation29_spill] sm:$0xff] %v3375_v24  ;;  %v3379_v45 = vpop.permute.xlu1 %650  ;;  %v3381_v5 = vpop.permute.xlu0 %645 }
  0xf9   : > { %4865 = vst [vmem:[#allocation30_spill] sm:$0xff] %v3379_v45  ;;  %855 = vperm.xlu0 %2853, %v3036_v14  }
  0xfa   : > { %4866 = vst [vmem:[#allocation31_spill] sm:$0xff] %v3381_v5 }
  0xff   : > { %2833 = vset.pattern.permute.xlu2 %v4807_v49  ;;  %2832 = vset.pattern.permute.xlu1 %v4807_v49  ;;  %v716_v54 = vpop.permute.xlu2 %715 }
 0x100   : > { %v3392_v24 = vadd.f32 %v716_v54, %v568_v42  ;;  %v3394_v45 = vadd.f32 %v716_v54, %v569_v36  ;;  %v3396_v5 = vpop.permute.xlu1 %665  ;;  %1185 = vperm.xlu2 %2833, %v3147_v33   ;;  %1125 = vperm.xlu1 %2832, %v3059_v18   ;;  %v3400_v3 = vpop.permute.xlu0 %660  ;;  %v4871_v54 = vmov 3   ;;  %v930_v33 = vperm.slane %v3371_v63, 1 }
 0x101   : > { %4869 = vst [vmem:[#allocation34_spill] sm:$0xff] %v3396_v5  ;;  %867 = vperm.xlu0 %2853, %v3054_v17   ;;  %v3425_v5 = vperm.slane %v931_v61, 1 }
 0x102   : > { %4867 = vst [vmem:[#allocation32_spill] sm:$0xff] %v3392_v24 }
 0x103   : > { %4868 = vst [vmem:[#allocation33_spill] sm:$0xff] %v3394_v45 }
 0x107   : > { %v731_v49 = vpop.permute.xlu2 %730 }
 0x108   : > { %v3405_v34 = vadd.f32 %v731_v49, %v574_v43  ;;  %v3407_v42 = vadd.f32 %v731_v49, %v575_v0  ;;  %v3409_v36 = vpop.permute.xlu1 %680  ;;  %2834 = vset.pattern.permute.xlu2 %v4871_v54  ;;  %1189 = vperm.xlu1 %2832, %v3142_v32   ;;  %v3413_v18 = vpop.permute.xlu0 %675  ;;  %v516_v49 = vmul.f32 %v3384_v39, %v3212_v57  ;;  %v3423_v0 = vperm.slane %v930_v33, 1 }
 0x109   : > { %4870 = vst [vmem:[#allocation35_spill] sm:$0xff] %v3409_v36  ;;  %879 = vperm.xlu0 %2853, %v3072_v20   ;;  %1383 = vperm.xlu2 %2834, %v3031_v13   ;;  %v517_v43 = vmul.f32 %v3386_v52, %v3212_v57 }
 0x10a   : > { %v740_v45 = vadd.f32 %v3333_v56, %v516_v49  ;;  %v522_v49 = vmul.f32 %v3384_v39, %v3160_v37 }
 0x10b   : > { %v741_v48 = vadd.f32 %v3333_v56, %v517_v43  ;;  %v523_v56 = vmul.f32 %v3386_v52, %v3160_v37 }
 0x10c   : > { %v746_v2 = vadd.f32 %v3342_v44, %v522_v49 }
 0x110   : > { %v3427_v36 = vpop.permute.xlu1 %695  ;;  %2836 = vset.pattern.permute.xlu1 %v4859_v51  ;;  %v3430_v20 = vpop.permute.xlu0 %690 }
 0x111   : > { %4872 = vst [vmem:[#allocation36_spill] sm:$0xff] %v3427_v36  ;;  %891 = vperm.xlu0 %2853, %v3090_v23   ;;  %v808_v24 = vpop.permute.xlu2 %807  ;;  %2837 = vset.pattern.permute.xlu2 %v4859_v51 }
 0x112   : > { %v938_v57 = vmul.f32 %v3423_v0, %v808_v24  ;;  %v939_v33 = vmul.f32 %v3425_v5, %v808_v24  ;;  %915 = vperm.xlu1 %2836, %v3126_v29   ;;  %919 = vperm.xlu2 %2837, %v3121_v28  }
 0x114   : > { %v3440_v61 = vadd.f32 %v938_v57, %v740_v45  ;;  %v3442_v36 = vadd.f32 %v939_v33, %v741_v48  ;;  %v747_v45 = vadd.f32 %v3342_v44, %v523_v56  ;;  %v4876_v33 = vmov 2  }
 0x116   : > { %4873 = vst [vmem:[#allocation37_spill] sm:$0xff] %v3440_v61 }
 0x117   : > { %4874 = vst [vmem:[#allocation38_spill] sm:$0xff] %v3442_v36 }
 0x118   : > { %v3448_v43 = vpop.permute.xlu1 %710  ;;  %v3450_v31 = vpop.permute.xlu0 %705 }
 0x119   : > { %4875 = vst [vmem:[#allocation39_spill] sm:$0xff] %v3450_v31  ;;  %899 = vperm.xlu0 %2853, %v3113_v27   ;;  %v820_v24 = vpop.permute.xlu2 %819 }
 0x11a   : > { %v944_v48 = vmul.f32 %v3423_v0, %v820_v24  ;;  %v945_v57 = vmul.f32 %v3425_v5, %v820_v24  ;;  %2838 = vset.pattern.permute.xlu1 %v4876_v33  ;;  %2839 = vset.pattern.permute.xlu2 %v4876_v33 }
 0x11b   : > { %1113 = vperm.xlu1 %2838, %v3041_v15   ;;  %1117 = vperm.xlu2 %2839, %v3036_v14  }
 0x11c   : > { %v3460_v37 = vadd.f32 %v944_v48, %v746_v2  ;;  %v3462_v31 = vadd.f32 %v945_v57, %v747_v45 }
 0x11e   : > { %4877 = vst [vmem:[#allocation40_spill] sm:$0xff] %v3460_v37 }
 0x11f   : > { %4878 = vst [vmem:[#allocation41_spill] sm:$0xff] %v3462_v31  ;;  %v557_v31 = vmul.f32 %v3386_v52, %v3300_v60 }
 0x120   : > { %v3465_v36 = vpop.permute.xlu1 %725  ;;  %v3467_v49 = vpop.permute.xlu0 %720 }
 0x121   : > { %895 = vperm.xlu0 %2853, %v3085_v22   ;;  %v3470_v44 = vpop.permute.xlu2 %827 }
 0x122   : > { %4879 = vst [vmem:[#allocation42_spill] sm:$0xff] %v3470_v44 }
 0x123   : > { %2840 = vset.pattern.permute.xlu1 %v4871_v54  ;;  %1177 = vperm.xlu2 %2839, %v3126_v29  }
 0x124   : > { %1451 = vperm.xlu1 %2840, %v3142_v32  }
 0x128   : > { %v3480_v24 = vpop.permute.xlu0 %735 }
 0x129   : > { %2857 = vset.pattern.permute.xlu0 %v4876_v33  ;;  %v3476_v2 = vpop.permute.xlu2 %839  ;;  %v3478_v56 = vpop.permute.xlu1 %803 }
 0x12a   : > { %4880 = vst [vmem:[#allocation43_spill] sm:$0xff] %v3476_v2  ;;  %1121 = vperm.xlu0 %2857, %v3031_v13  }
 0x12b   : > { %4881 = vst [vmem:[#allocation44_spill] sm:$0xff] %v3478_v56  ;;  %2841 = vset.pattern.permute.xlu2 %v4871_v54  ;;  %v556_v56 = vmul.f32 %v3384_v39, %v3300_v60 }
 0x12c   : > { %1375 = vperm.xlu1 %2840, %v3041_v15   ;;  %1379 = vperm.xlu2 %2841, %v3036_v14  }
 0x12d   : > { %v780_v44 = vadd.f32 %v3361_v1, %v556_v56 }
 0x131   : > { %v3486_v45 = vpop.permute.xlu2 %851  ;;  %v3488_v48 = vpop.permute.xlu1 %815 }
 0x132   : > { %4882 = vst [vmem:[#allocation45_spill] sm:$0xff] %v3488_v48  ;;  %1181 = vperm.xlu0 %2857, %v3121_v28   ;;  %v3491_v32 = vpop.permute.xlu0 %1387 }
 0x134   : > { %2842 = vset.pattern.permute.xlu1 %v4859_v51  ;;  %2843 = vset.pattern.permute.xlu2 %v4859_v51 }
 0x135   : > { %907 = vperm.xlu1 %2842, %v3103_v25   ;;  %911 = vperm.xlu2 %2843, %v3131_v30  }
 0x139   : > { %v3497_v13 = vpop.permute.xlu2 %863  ;;  %v3499_v15 = vpop.permute.xlu1 %823 }
 0x13a   : > { %4883 = vst [vmem:[#allocation46_spill] sm:$0xff] %v3499_v15  ;;  %1105 = vperm.xlu0 %2857, %v3018_v11   ;;  %v3502_v14 = vpop.permute.xlu0 %1447 }
 0x13d   : > { %2844 = vset.pattern.permute.xlu1 %v4876_v33  ;;  %2845 = vset.pattern.permute.xlu2 %v4871_v54 }
 0x13e   : > { %1109 = vperm.xlu1 %2844, %v3013_v10   ;;  %1439 = vperm.xlu2 %2845, %v3126_v29  }
 0x141   : > { %v3508_v28 = vpop.permute.xlu2 %875  ;;  %v3510_v57 = vpop.permute.xlu1 %835 }
 0x142   : > { %4884 = vst [vmem:[#allocation47_spill] sm:$0xff] %v3508_v28  ;;  %1153 = vperm.xlu0 %2857, %v3090_v23   ;;  %v3513_v48 = vpop.permute.xlu0 %1443  ;;  %v781_v23 = vadd.f32 %v3361_v1, %v557_v31 }
 0x143   : > { %4885 = vst [vmem:[#allocation48_spill] sm:$0xff] %v3510_v57 }
 0x146   : > { %1169 = vperm.xlu1 %2844, %v3103_v25   ;;  %2846 = vset.pattern.permute.xlu2 %v4876_v33 }
 0x147   : > { %1173 = vperm.xlu2 %2846, %v3131_v30  }
 0x149   : > { %v888_v29 = vpop.permute.xlu2 %887  ;;  %v3522_v37 = vpop.permute.xlu1 %847 }
 0x14a   : > { %v978_v15 = vmul.f32 %v3423_v0, %v888_v29  ;;  %v979_v57 = vmul.f32 %v3425_v5, %v888_v29  ;;  %1085 = vperm.xlu0 %2857, %v2977_v4   ;;  %v3529_v2 = vpop.permute.xlu0 %1435 }
 0x14c   : > { %v3531_v61 = vadd.f32 %v978_v15, %v780_v44  ;;  %v3533_v60 = vadd.f32 %v979_v57, %v781_v23 }
 0x14e   : > { %4886 = vst [vmem:[#allocation49_spill] sm:$0xff] %v3531_v61  ;;  %2847 = vset.pattern.permute.xlu1 %v4871_v54 }
 0x14f   : > { %4887 = vst [vmem:[#allocation50_spill] sm:$0xff] %v3533_v60  ;;  %1367 = vperm.xlu1 %2847, %v3018_v11   ;;  %2848 = vset.pattern.permute.xlu2 %v4871_v54  ;;  %v528_v11 = vmul.f32 %v3384_v39, %v3225_v62  ;;  %v1455_v60 = vperm.slane %v3371_v63, 7 }
 0x150   : > { %1371 = vperm.xlu2 %2848, %v3013_v10   ;;  %v529_v10 = vmul.f32 %v3386_v52, %v3225_v62 }
 0x151   : > { %v3539_v30 = vpop.permute.xlu1 %859  ;;  %v3541_v31 = vpop.permute.xlu2 %927 }
 0x152   : > { %1145 = vperm.xlu0 %2857, %v3067_v19   ;;  %v753_v15 = vadd.f32 %v3353_v41, %v529_v10  ;;  %v1193_v10 = vperm.slane %v3371_v63, 6 }
 0x153   : > { %v3544_v1 = vpop.permute.xlu0 %811 }
 0x154   : > { %4888 = vst [vmem:[#allocation51_spill] sm:$0xff] %v3544_v1  ;;  %v1454_v1 = vperm.slane %v3371_v63, 3 }
 0x157   : > { %2849 = vset.pattern.permute.xlu1 %v4859_v51  ;;  %v752_v51 = vadd.f32 %v3353_v41, %v528_v11  ;;  %v535_v11 = vmul.f32 %v3386_v52, %v3240_v38  ;;  %v1192_v41 = vperm.slane %v3371_v63, 2 }
 0x158   : > { %903 = vperm.xlu1 %2849, %v3108_v26   ;;  %2850 = vset.pattern.permute.xlu2 %v4876_v33 }
 0x159   : > { %v3549_v44 = vpop.permute.xlu1 %871  ;;  %1097 = vperm.xlu2 %2850, %v2995_v7  }
 0x15a   : > { %4889 = vst [vmem:[#allocation52_spill] sm:$0xff] %v3549_v44  ;;  %1137 = vperm.xlu0 %2857, %v3077_v21   ;;  %v1186_v19 = vpop.permute.xlu2 %1185  ;;  %v534_v21 = vmul.f32 %v3384_v39, %v3240_v38 }
 0x15b   : > { %v832_v56 = vpop.permute.xlu0 %831 }
 0x15c   : > { %v950_v57 = vmul.f32 %v3423_v0, %v832_v56  ;;  %v951_v29 = vmul.f32 %v3425_v5, %v832_v56 }
 0x15e   : > { %v3561_v23 = vadd.f32 %v950_v57, %v752_v51  ;;  %v3563_v44 = vadd.f32 %v951_v29, %v753_v15  ;;  %v758_v51 = vadd.f32 %v3365_v16, %v534_v21  ;;  %v759_v15 = vadd.f32 %v3365_v16, %v535_v11 }
 0x15f   : > { %v3594_v21 = vperm.slane %v1454_v1, 3  ;;  %v3596_v16 = vperm.slane %v1455_v60, 3  ;;  %v544_v60 = vmul.f32 %v3384_v39, %v3272_v59 }
 0x160   : > { %4890 = vst [vmem:[#allocation53_spill] sm:$0xff] %v3561_v23  ;;  %2851 = vset.pattern.permute.xlu1 %v4876_v33 }
 0x161   : > { %4891 = vst [vmem:[#allocation54_spill] sm:$0xff] %v3563_v44  ;;  %v3566_v62 = vpop.permute.xlu1 %883  ;;  %1101 = vperm.xlu1 %2851, %v3023_v12   ;;  %2852 = vset.pattern.permute.xlu2 %v4871_v54  ;;  %v3592_v44 = vperm.slane %v1193_v10, 2 }
 0x162   : > { %4892 = vst [vmem:[#allocation55_spill] sm:$0xff] %v3566_v62  ;;  %1069 = vperm.xlu0 %2857, %v2987_v6   ;;  %1431 = vperm.xlu2 %2852, %v3103_v25   ;;  %v3590_v25 = vperm.slane %v1192_v41, 2 }
 0x163   : > { %v844_v56 = vpop.permute.xlu0 %843  ;;  %v3582_v29 = vpop.permute.xlu2 %1383 }
 0x164   : > { %v956_v57 = vmul.f32 %v3423_v0, %v844_v56  ;;  %v957_v38 = vmul.f32 %v3425_v5, %v844_v56  ;;  %v1258_v63 = vmul.f32 %v3590_v25, %v1186_v19 }
 0x166   : > { %v3586_v61 = vadd.f32 %v956_v57, %v758_v51  ;;  %v3588_v62 = vadd.f32 %v957_v38, %v759_v15  ;;  %v1259_v51 = vmul.f32 %v3592_v44, %v1186_v19  ;;  %v545_v15 = vmul.f32 %v3386_v52, %v3272_v59 }
 0x167   : > { %v1520_v19 = vmul.f32 %v3594_v21, %v3502_v14  ;;  %v966_v38 = vmul.f32 %v3423_v0, %v3497_v13  ;;  %v768_v59 = vadd.f32 %v3337_v50, %v544_v60 }
 0x168   : > { %4893 = vst [vmem:[#allocation56_spill] sm:$0xff] %v3586_v61 }
 0x169   : > { %4894 = vst [vmem:[#allocation57_spill] sm:$0xff] %v3588_v62  ;;  %v924_v11 = vpop.permute.xlu1 %923  ;;  %1161 = vperm.xlu1 %2851, %v3113_v27  }
 0x16a   : > { %v996_v56 = vmul.f32 %v3423_v0, %v924_v11  ;;  %v997_v23 = vmul.f32 %v3425_v5, %v924_v11  ;;  %1129 = vperm.xlu0 %2857, %v3054_v17   ;;  %2854 = vset.pattern.permute.xlu2 %v4876_v33  ;;  %v1521_v17 = vmul.f32 %v3596_v16, %v3502_v14 }
 0x16b   : > { %v3605_v41 = vpop.permute.xlu0 %855  ;;  %1165 = vperm.xlu2 %2854, %v3108_v26   ;;  %v546_v11 = vmul.f32 %v3384_v39, %v3270_v58  ;;  %v769_v14 = vadd.f32 %v3337_v50, %v545_v15 }
 0x16c   : > { %v1060_v1 = vadd.f32 %v996_v56, %v3405_v34  ;;  %v1061_v10 = vadd.f32 %v997_v23, %v3407_v42  ;;  %v3618_v57 = vpop.permute.xlu2 %919  ;;  %v967_v34 = vmul.f32 %v3425_v5, %v3497_v13  ;;  %v547_v56 = vmul.f32 %v3386_v52, %v3270_v58 }
 0x16d   : > { %v770_v61 = vadd.f32 %v3400_v3, %v546_v11  ;;  %v1490_v13 = vmul.f32 %v3594_v21, %v3491_v32  ;;  %v553_v11 = vmul.f32 %v3386_v52, %v3285_v40 }
 0x16e   : > { %v1322_v42 = vadd.f32 %v1258_v63, %v1060_v1  ;;  %v1323_v23 = vadd.f32 %v1259_v51, %v1061_v10  ;;  %v1491_v63 = vmul.f32 %v3596_v16, %v3491_v32  ;;  %v1030_v51 = vadd.f32 %v966_v38, %v768_v59 }
 0x16f   : > { %v1031_v1 = vadd.f32 %v967_v34, %v769_v14  ;;  %v771_v15 = vadd.f32 %v3400_v3, %v547_v56  ;;  %v777_v56 = vadd.f32 %v3413_v18, %v553_v11  ;;  %v541_v11 = vmul.f32 %v3386_v52, %v3255_v46 }
 0x170   : > { %v3630_v28 = vadd.f32 %v1520_v19, %v1322_v42  ;;  %v3632_v62 = vadd.f32 %v1521_v17, %v1323_v23 }
 0x171   : > { %2855 = vset.pattern.permute.xlu1 %v4871_v54 }
 0x172   : > { %v1126_v60 = vpop.permute.xlu1 %1125  ;;  %1359 = vperm.xlu1 %2855, %v2995_v7   ;;  %2874 = vset.pattern.permute.xlu0 %v4871_v54 }
 0x173   : > { %v1228_v50 = vmul.f32 %v3590_v25, %v1126_v60  ;;  %v1229_v58 = vmul.f32 %v3592_v44, %v1126_v60  ;;  %v868_v10 = vpop.permute.xlu0 %867  ;;  %1347 = vperm.xlu0 %2874, %v2977_v4   ;;  %2856 = vset.pattern.permute.xlu2 %v4871_v54  ;;  %v552_v4 = vmul.f32 %v3384_v39, %v3285_v40 }
 0x174   : > { %v968_v32 = vmul.f32 %v3423_v0, %v868_v10  ;;  %v969_v19 = vmul.f32 %v3425_v5, %v868_v10  ;;  %1363 = vperm.xlu2 %2856, %v3023_v12  }
 0x175   : > { %v1292_v17 = vadd.f32 %v1228_v50, %v1030_v51  ;;  %v1293_v38 = vadd.f32 %v1229_v58, %v1031_v1  ;;  %v3654_v42 = vpop.permute.xlu2 %1117  ;;  %v776_v12 = vadd.f32 %v3413_v18, %v552_v4  ;;  %v558_v18 = vmul.f32 %v3384_v39, %v3298_v53 }
 0x176   : > { %v3650_v7 = vadd.f32 %v968_v32, %v770_v61  ;;  %v3652_v34 = vadd.f32 %v969_v19, %v771_v15  ;;  %v4897_v15 = vmov 0   ;;  %v540_v4 = vmul.f32 %v3384_v39, %v3255_v46 }
 0x177   : > { %v3656_v23 = vadd.f32 %v1490_v13, %v1292_v17  ;;  %v3658_v3 = vadd.f32 %v1491_v63, %v1293_v38  ;;  %v782_v60 = vadd.f32 %v3430_v20, %v558_v18  ;;  %v539_v17 = vmul.f32 %v3386_v52, %v3257_v47  ;;  %v4902_v18 = vld [vmem:[#allocation22_spill] sm:$0xff] }
 0x178   : > { %v576_v46 = vmul.f32 %v3384_v39, %v4902_v18 }
 0x17a   : > { %v3664_v59 = vpop.permute.xlu1 %1189  ;;  %2858 = vset.pattern.permute.xlu1 %v4876_v33 }
 0x17b   : > { %v880_v61 = vpop.permute.xlu0 %879  ;;  %1089 = vperm.xlu1 %2858, %v3005_v9   ;;  %1331 = vperm.xlu0 %2874, %v2987_v6   ;;  %v559_v6 = vmul.f32 %v3386_v52, %v3298_v53  ;;  %v538_v53 = vmul.f32 %v3384_v39, %v3257_v47  ;;  %v4900_v47 = vld [vmem:[#allocation18_spill] sm:$0xff] }
 0x17c   : > { %v974_v14 = vmul.f32 %v3423_v0, %v880_v61  ;;  %v975_v13 = vmul.f32 %v3425_v5, %v880_v61  ;;  %2859 = vset.pattern.permute.xlu2 %v4876_v33  ;;  %v573_v61 = vmul.f32 %v3386_v52, %v3283_v35 }
 0x17d   : > { %1093 = vperm.xlu2 %2859, %v3000_v8   ;;  %v3679_v51 = vpop.permute.xlu2 %1177  ;;  %v783_v50 = vadd.f32 %v3430_v20, %v559_v6  ;;  %v542_v20 = vmul.f32 %v3384_v39, %v3208_v55  ;;  %v577_v6 = vmul.f32 %v3386_v52, %v4902_v18 }
 0x17e   : > { %v3674_v40 = vadd.f32 %v974_v14, %v776_v12  ;;  %v3676_v63 = vadd.f32 %v975_v13, %v777_v56  ;;  %v572_v12 = vmul.f32 %v3384_v39, %v3283_v35  ;;  %v563_v56 = vmul.f32 %v3386_v52, %v4900_v47  ;;  %v4901_v14 = vld [vmem:[#allocation20_spill] sm:$0xff] }
 0x17f   : > { %v571_v13 = vmul.f32 %v3386_v52, %v4901_v14 }
 0x180   : > { %4895 = vst [vmem:[#allocation58_spill] sm:$0xff] %v3674_v40 }
 0x181   : > { %4896 = vst [vmem:[#allocation59_spill] sm:$0xff] %v3676_v63 }
 0x183   : > { %v892_v1 = vpop.permute.xlu0 %891  ;;  %2860 = vset.pattern.permute.xlu1 %v4871_v54  ;;  %2879 = vset.pattern.permute.xlu0 %v4897_v15  ;;  %v4906_v15 = vld [vmem:[#allocation31_spill] sm:$0xff] }
 0x184   : > { %v980_v58 = vmul.f32 %v3423_v0, %v892_v1  ;;  %v981_v10 = vmul.f32 %v3425_v5, %v892_v1  ;;  %v3690_v8 = vpop.permute.xlu1 %915  ;;  %1423 = vperm.xlu1 %2860, %v3113_v27   ;;  %v543_v27 = vmul.f32 %v3386_v52, %v3208_v55  ;;  %v570_v55 = vmul.f32 %v3384_v39, %v4901_v14 }
 0x185   : > { %2861 = vset.pattern.permute.xlu2 %v4871_v54  ;;  %v960_v14 = vmul.f32 %v3423_v0, %v3486_v45 }
 0x186   : > { %v3696_v32 = vadd.f32 %v980_v58, %v782_v60  ;;  %v3698_v19 = vadd.f32 %v981_v10, %v783_v50  ;;  %1427 = vperm.xlu2 %2861, %v3108_v26   ;;  %v3706_v38 = vpop.permute.xlu2 %1379  ;;  %v562_v26 = vmul.f32 %v3384_v39, %v4900_v47  ;;  %v4903_v60 = vld [vmem:[#allocation23_spill] sm:$0xff]  ;;  %v4904_v50 = vld [vmem:[#allocation29_spill] sm:$0xff]  ;;  %v4905_v47 = vld [vmem:[#allocation30_spill] sm:$0xff] }
 0x187   : > { %v762_v35 = vadd.f32 %v4903_v60, %v538_v53  ;;  %v763_v1 = vadd.f32 %v4903_v60, %v539_v17  ;;  %v787_v10 = vadd.f32 %v4904_v50, %v563_v56  ;;  %v766_v63 = vadd.f32 %v4905_v47, %v542_v20 }
 0x188   : > { %4898 = vst [vmem:[#allocation60_spill] sm:$0xff] %v3696_v32  ;;  %v786_v58 = vadd.f32 %v4904_v50, %v562_v26  ;;  %v764_v53 = vadd.f32 %v4906_v15, %v540_v4  ;;  %v765_v17 = vadd.f32 %v4906_v15, %v541_v11  ;;  %v796_v26 = vadd.f32 %v3465_v36, %v572_v12 }
 0x189   : > { %4899 = vst [vmem:[#allocation61_spill] sm:$0xff] %v3698_v19  ;;  %v767_v19 = vadd.f32 %v4905_v47, %v543_v27  ;;  %v961_v56 = vmul.f32 %v3425_v5, %v3486_v45  ;;  %v3749_v27 = vadd.f32 %v3465_v36, %v573_v61  ;;  %v794_v60 = vadd.f32 %v3467_v49, %v570_v55 }
 0x18a   : > { %v795_v15 = vadd.f32 %v3467_v49, %v571_v13  ;;  %v998_v45 = vmul.f32 %v3423_v0, %v3541_v31  ;;  %v999_v4 = vmul.f32 %v3425_v5, %v3541_v31  ;;  %v964_v36 = vmul.f32 %v3423_v0, %v3539_v30 }
 0x18b   : > { %v900_v40 = vpop.permute.xlu0 %899  ;;  %v801_v11 = vadd.f32 %v3480_v24, %v577_v6  ;;  %v3767_v12 = vadd.f32 %v960_v14, %v762_v35  ;;  %v3773_v61 = vadd.f32 %v961_v56, %v763_v1  ;;  %v3777_v31 = vmul.f32 %v3594_v21, %v3513_v48 }
 0x18c   : > { %v984_v32 = vmul.f32 %v3423_v0, %v900_v40  ;;  %v985_v18 = vmul.f32 %v3425_v5, %v900_v40  ;;  %2862 = vset.pattern.permute.xlu1 %v4876_v33  ;;  %v963_v55 = vmul.f32 %v3425_v5, %v3605_v41  ;;  %v994_v13 = vmul.f32 %v3423_v0, %v3618_v57 }
 0x18d   : > { %v3746_v20 = vpop.permute.xlu1 %1113  ;;  %1157 = vperm.xlu1 %2862, %v3085_v22   ;;  %v965_v22 = vmul.f32 %v3425_v5, %v3539_v30  ;;  %v3789_v30 = vmul.f32 %v3596_v16, %v3529_v2  ;;  %v1063_v35 = vadd.f32 %v999_v4, %v801_v11  ;;  %v1028_v1 = vadd.f32 %v964_v36, %v766_v63 }
 0x18e   : > { %v3752_v50 = vadd.f32 %v984_v32, %v786_v58  ;;  %v3754_v40 = vadd.f32 %v985_v18, %v787_v10  ;;  %1351 = vperm.xlu2 %2861, %v3005_v9   ;;  %v800_v32 = vadd.f32 %v3480_v24, %v576_v46  ;;  %v962_v9 = vmul.f32 %v3423_v0, %v3605_v41 }
 0x18f   : > { %v3771_v49 = vpop.permute.xlu2 %911  ;;  %v3785_v24 = vmul.f32 %v3594_v21, %v3529_v2  ;;  %v1260_v46 = vmul.f32 %v3590_v25, %v3664_v59  ;;  %v1261_v41 = vmul.f32 %v3592_v44, %v3664_v59  ;;  %v1029_v10 = vadd.f32 %v965_v22, %v767_v19  ;;  %v3835_v22 = vld [vmem:[%s4768_s1 + $0x20] sm:$0xff] }
 0x190   : > { %v1062_v6 = vadd.f32 %v998_v45, %v800_v32  ;;  %v3801_v47 = vmul.f32 %v3594_v21, %v3582_v29  ;;  %v3805_v2 = vmul.f32 %v3596_v16, %v3582_v29  ;;  %v992_v14 = vmul.f32 %v3423_v0, %v3690_v8 }
 0x191   : > { %v1026_v18 = vadd.f32 %v962_v9, %v764_v53  ;;  %v1027_v56 = vadd.f32 %v963_v55, %v765_v17  ;;  %v995_v63 = vmul.f32 %v3425_v5, %v3618_v57  ;;  %v1224_v59 = vmul.f32 %v3590_v25, %v3654_v42  ;;  %v2880_v57 = vld [vmem:[%s4768_s1 + $0x38] sm:$0xff] }
 0x192   : > { %v3813_v19 = vadd.f32 %v994_v13, %v796_v26  ;;  %v1225_v45 = vmul.f32 %v3592_v44, %v3654_v42  ;;  %v1324_v4 = vadd.f32 %v1260_v46, %v1062_v6  ;;  %v993_v29 = vmul.f32 %v3425_v5, %v3690_v8 }
 0x193   : > { %v3797_v58 = vpop.permute.xlu0 %895  ;;  %v1325_v53 = vadd.f32 %v1261_v41, %v1063_v35  ;;  %v1254_v42 = vmul.f32 %v3590_v25, %v3679_v51  ;;  %v1056_v32 = vadd.f32 %v992_v14, %v794_v60  ;;  %v1486_v8 = vmul.f32 %v3594_v21, %v3706_v38 }
 0x194   : > { %v1487_v11 = vmul.f32 %v3596_v16, %v3706_v38  ;;  %v1288_v9 = vadd.f32 %v1224_v59, %v1026_v18  ;;  %v1648_v46 = vmax.f32 %v3630_v28, 0.0  ;;  %v1289_v60 = vadd.f32 %v1225_v45, %v1027_v56 }
 0x195   : > { %2863 = vset.pattern.permute.xlu1 %v4871_v54  ;;  %v1255_v35 = vmul.f32 %v3592_v44, %v3679_v51  ;;  %v1057_v41 = vadd.f32 %v993_v29, %v795_v15  ;;  %v1222_v38 = vmul.f32 %v3590_v25, %v3746_v20  ;;  %v1223_v14 = vmul.f32 %v3592_v44, %v3746_v20 }
 0x196   : > { %v1452_v36 = vpop.permute.xlu1 %1451  ;;  %1355 = vperm.xlu1 %2863, %v2880_v57   ;;  %2864 = vset.pattern.permute.xlu2 %v4876_v33  ;;  %v1649_v57 = vmax.f32 %v3632_v62, 0.0  ;;  %v1059_v59 = vadd.f32 %v995_v63, %v3749_v27  ;;  %v1551_v28 = vadd.f32 %v1487_v11, %v1289_v60  ;;  %v990_v20 = vmul.f32 %v3423_v0, %v3771_v49 }
 0x197   : > { %v1522_v17 = vmul.f32 %v3594_v21, %v1452_v36  ;;  %v1523_v26 = vmul.f32 %v3596_v16, %v1452_v36  ;;  %1081 = vperm.xlu2 %2864, %v3835_v22   ;;  %v991_v62 = vmul.f32 %v3425_v5, %v3771_v49  ;;  %v1287_v27 = vadd.f32 %v1223_v14, %v3773_v61 }
 0x198   : > { %v1440_v55 = vpop.permute.xlu2 %1439  ;;  %v1619_v61 = vmax.f32 %v3658_v3, 0.0 }
 0x199   : > { %v1586_v13 = vadd.f32 %v1522_v17, %v1324_v4  ;;  %v1587_v6 = vadd.f32 %v1523_v26, %v1325_v53  ;;  %v1550_v4 = vadd.f32 %v1486_v8, %v1288_v9  ;;  %v1318_v53 = vadd.f32 %v1254_v42, %v1056_v32  ;;  %v2882_v32 = vld [vmem:[%s4768_s1 + $0xb0] sm:$0xff] }
 0x19a   : > { %v1286_v17 = vadd.f32 %v1222_v38, %v3767_v12  ;;  %v1319_v26 = vadd.f32 %v1255_v35, %v1057_v41  ;;  %v1618_v12 = vmax.f32 %v3656_v23, 0.0  ;;  %v1516_v11 = vmul.f32 %v3594_v21, %v1440_v55  ;;  %v4908_v35 = vld [vmem:[#allocation33_spill] sm:$0xff] }
 0x19b   : > { %v1650_v36 = vmax.f32 %v1586_v13, 0.0  ;;  %v1651_v18 = vmax.f32 %v1587_v6, 0.0  ;;  %v1614_v13 = vmax.f32 %v1550_v4, 0.0  ;;  %v4907_v6 = vld [vmem:[#allocation32_spill] sm:$0xff]  ;;  %v1055_v41 = vadd.f32 %v991_v62, %v4908_v35 }
 0x19c   : > { %v1122_v56 = vpop.permute.xlu0 %1121  ;;  %v1054_v60 = vadd.f32 %v990_v20, %v4907_v6  ;;  %v4909_v6 = vld [vmem:[#allocation13_spill] sm:$0xff] }
 0x19d   : > { %v1226_v45 = vmul.f32 %v3590_v25, %v1122_v56  ;;  %v1227_v51 = vmul.f32 %v3592_v44, %v1122_v56  ;;  %v1682_v15 = vpack.c.bf16 %v1650_v36, %v1648_v46  ;;  %v1683_v29 = vpack.c.bf16 %v1651_v18, %v1649_v57 }
 0x19e   : > { %1415 = vperm.xlu1 %2863, %v2882_v32   ;;  %v1376_v8 = vpop.permute.xlu1 %1375  ;;  %v1615_v46 = vmax.f32 %v1551_v28, 0.0  ;;  %v567_v35 = vmul.f32 %v3386_v52, %v4909_v6 }
 0x19f   : > { %v1290_v63 = vadd.f32 %v1226_v45, %v1028_v1  ;;  %v1291_v42 = vadd.f32 %v1227_v51, %v1029_v10  ;;  %2157 = vmatpush.bf16.msra.mxu1 %v1682_v15  ;;  %v1484_v9 = vmul.f32 %v3594_v21, %v1376_v8  ;;  %v1485_v49 = vmul.f32 %v3596_v16, %v1376_v8  ;;  %v2883_v1 = vld [vmem:[%s4768_s1 + $0xb8] sm:$0xff] }
 0x1a0   : > { %2335 = vmatpush.bf16.msra.mxu3 %v1683_v29  ;;  %2865 = vset.pattern.permute.xlu2 %v4871_v54  ;;  %v1517_v45 = vmul.f32 %v3596_v16, %v1440_v55  ;;  %v1519_v8 = vmul.f32 %v3596_v16, %v3513_v48 }
 0x1a1   : > { %1419 = vperm.xlu2 %2865, %v2883_v1   ;;  %v1552_v10 = vadd.f32 %v3801_v47, %v1290_v63  ;;  %v1553_v23 = vadd.f32 %v3805_v2, %v1291_v42  ;;  %v1548_v38 = vadd.f32 %v1484_v9, %v1286_v17  ;;  %v1549_v14 = vadd.f32 %v1485_v49, %v1287_v27  ;;  %v1174_v36 = vpop.permute.xlu2 %1173 }
 0x1a2   : > { %v1252_v3 = vmul.f32 %v3590_v25, %v1174_v36  ;;  %v1253_v57 = vmul.f32 %v3592_v44, %v1174_v36  ;;  %v1580_v47 = vadd.f32 %v1516_v11, %v1318_v53  ;;  %v1581_v11 = vadd.f32 %v1517_v45, %v1319_v26 }
 0x1a3   : > { %v1616_v18 = vmax.f32 %v1552_v10, 0.0  ;;  %v1617_v56 = vmax.f32 %v1553_v23, 0.0  ;;  %v1612_v2 = vmax.f32 %v1548_v38, 0.0  ;;  %v1613_v4 = vmax.f32 %v1549_v14, 0.0  ;;  %v2885_v23 = vld [vmem:[%s4768_s1 + $0x10] sm:$0xff] }
 0x1a4   : > { %v1182_v51 = vpop.permute.xlu0 %1181  ;;  %v1316_v28 = vadd.f32 %v1252_v3, %v1054_v60  ;;  %v1317_v15 = vadd.f32 %v1253_v57, %v1055_v41  ;;  %v1645_v48 = vmax.f32 %v1581_v11, 0.0  ;;  %v566_v60 = vmul.f32 %v3384_v39, %v4909_v6  ;;  %v4910_v14 = vld [vmem:[#allocation4_spill] sm:$0xff] }
 0x1a5   : > { %v1256_v29 = vmul.f32 %v3590_v25, %v1182_v51  ;;  %v1257_v17 = vmul.f32 %v3592_v44, %v1182_v51  ;;  %v1666_v20 = vpack.c.bf16 %v1618_v12, %v1616_v18  ;;  %v1667_v62 = vpack.c.bf16 %v1619_v61, %v1617_v56  ;;  %v2884_v12 = vld [vmem:[%s4768_s1 + $0xa8] sm:$0xff]  ;;  %v2887_v56 = vld [vmem:[%s4768_s1 + $0xa0] sm:$0xff] }
 0x1a6   : > { %v1664_v27 = vpack.c.bf16 %v1614_v13, %v1612_v2  ;;  %v1665_v63 = vpack.c.bf16 %v1615_v46, %v1613_v4  ;;  %2866 = vset.pattern.permute.xlu1 %v4876_v33  ;;  %v3879_v55 = vadd.f32 %v3785_v24, %v1316_v28  ;;  %v3882_v53 = vadd.f32 %v3789_v30, %v1317_v15  ;;  %v4911_v28 = vld [vmem:[#allocation28_spill] sm:$0xff] }
 0x1a7   : > { %v1320_v42 = vadd.f32 %v1256_v29, %v3813_v19  ;;  %v1321_v32 = vadd.f32 %v1257_v17, %v1059_v59  ;;  %1149 = vperm.xlu1 %2866, %v2884_v12   ;;  %v908_v9 = vpop.permute.xlu1 %907  ;;  %2068 = vmatpush.bf16.msra.mxu0 %v1666_v20  ;;  %v1644_v30 = vmax.f32 %v1580_v47, 0.0  ;;  %v536_v36 = vmul.f32 %v3384_v39, %v4910_v14 }
 0x1a8   : > { %2246 = vmatpush.bf16.msra.mxu2 %v1667_v62  ;;  %v988_v41 = vmul.f32 %v3423_v0, %v908_v9  ;;  %v989_v38 = vmul.f32 %v3425_v5, %v908_v9  ;;  %v537_v3 = vmul.f32 %v3386_v52, %v4910_v14  ;;  %v958_v57 = vmul.f32 %v3423_v0, %v3522_v37 }
 0x1a9   : > { %1343 = vperm.xlu2 %2865, %v3835_v22   ;;  %v1582_v24 = vadd.f32 %v3777_v31, %v1320_v42  ;;  %v1583_v19 = vadd.f32 %v1519_v8, %v1321_v32  ;;  %v3898_v31 = vld [vmem:[%s4768_s1 + $0x18] sm:$0xff]  ;;  %v959_v18 = vmul.f32 %v3425_v5, %v3522_v37  ;;  %v790_v47 = vadd.f32 %v3448_v43, %v566_v60 }
 0x1aa   : > { %v1372_v59 = vpop.permute.xlu2 %1371  ;;  %v791_v51 = vadd.f32 %v3448_v43, %v567_v35  ;;  %v760_v15 = vadd.f32 %v4911_v28, %v536_v36  ;;  %v761_v37 = vadd.f32 %v4911_v28, %v537_v3  ;;  %v1642_v60 = vmax.f32 %v3879_v55, 0.0 }
 0x1ab   : > { %v1646_v49 = vmax.f32 %v1582_v24, 0.0  ;;  %2069 = vmatpush.bf16.msra.mxu0 %v1664_v27  ;;  %v1647_v26 = vmax.f32 %v1583_v19, 0.0  ;;  %v1052_v29 = vadd.f32 %v988_v41, %v790_v47  ;;  %v1482_v24 = vmul.f32 %v3594_v21, %v1372_v59  ;;  %v4912_v41 = vld [vmem:[#allocation56_spill] sm:$0xff] }
 0x1ac   : > { %v1106_v61 = vpop.permute.xlu0 %1105  ;;  %2247 = vmatpush.bf16.msra.mxu2 %v1665_v63  ;;  %v1053_v17 = vadd.f32 %v989_v38, %v791_v51  ;;  %v1022_v43 = vadd.f32 %v958_v57, %v760_v15  ;;  %v1023_v63 = vadd.f32 %v959_v18, %v761_v37  ;;  %v1643_v35 = vmax.f32 %v3882_v53, 0.0  ;;  %v4913_v38 = vld [vmem:[#allocation57_spill] sm:$0xff] }
 0x1ad   : > { %v1680_v1 = vpack.c.bf16 %v1646_v49, %v1644_v30  ;;  %v1681_v10 = vpack.c.bf16 %v1647_v26, %v1645_v48  ;;  %v1218_v19 = vmul.f32 %v3590_v25, %v1106_v61  ;;  %v1219_v30 = vmul.f32 %v3592_v44, %v1106_v61 }
 0x1af   : > { %2158 = vmatpush.bf16.msra.mxu1 %v1680_v1  ;;  %1073 = vperm.xlu1 %2866, %v2885_v23   ;;  %v1282_v61 = vadd.f32 %v1218_v19, %v4912_v41  ;;  %v1283_v14 = vadd.f32 %v1219_v30, %v4913_v38  ;;  %v2889_v19 = vld [vmem:[%s4768_s1] sm:$0xff] }
 0x1b0   : > { %2336 = vmatpush.bf16.msra.mxu3 %v1681_v10  ;;  %v1110_v22 = vpop.permute.xlu1 %1109  ;;  %v2888_v10 = vld [vmem:[%s4768_s1 + $0x98] sm:$0xff] }
 0x1b1   : > { %2867 = vset.pattern.permute.xlu2 %v4876_v33  ;;  %v1220_v20 = vmul.f32 %v3590_v25, %v1110_v22  ;;  %v1221_v62 = vmul.f32 %v3592_v44, %v1110_v22 }
 0x1b2   : > { %1077 = vperm.xlu2 %2867, %v3898_v31  }
 0x1b3   : > { %v3901_v13 = vpop.permute.xlu2 %1097  ;;  %v1284_v49 = vadd.f32 %v1220_v20, %v1022_v43  ;;  %v1285_v48 = vadd.f32 %v1221_v62, %v1023_v63 }
 0x1b4   : > { %v3903_v46 = vpop.permute.xlu0 %1153 }
 0x1b7   : > { %2868 = vset.pattern.permute.xlu1 %v4871_v54 }
 0x1b8   : > { %1407 = vperm.xlu1 %2868, %v2887_v56   ;;  %v1170_v45 = vpop.permute.xlu1 %1169 }
 0x1b9   : > { %v1250_v2 = vmul.f32 %v3590_v25, %v1170_v45  ;;  %v1251_v4 = vmul.f32 %v3592_v44, %v1170_v45  ;;  %v1546_v45 = vadd.f32 %v1482_v24, %v1284_v49 }
 0x1ba   : > { %2869 = vset.pattern.permute.xlu2 %v4871_v54 }
 0x1bb   : > { %1411 = vperm.xlu2 %2869, %v2884_v12   ;;  %v1314_v32 = vadd.f32 %v1250_v2, %v1052_v29  ;;  %v1315_v8 = vadd.f32 %v1251_v4, %v1053_v17  ;;  %v1483_v12 = vmul.f32 %v3596_v16, %v1372_v59  ;;  %v4914_v2 = vld [vmem:[#allocation14_spill] sm:$0xff]  ;;  %v4915_v17 = vld [vmem:[#allocation47_spill] sm:$0xff] }
 0x1bc   : > { %v3932_v27 = vpop.permute.xlu0 %1085  ;;  %v1432_v42 = vpop.permute.xlu2 %1431  ;;  %v550_v4 = vmul.f32 %v3384_v39, %v4914_v2  ;;  %v551_v28 = vmul.f32 %v3386_v52, %v4914_v2  ;;  %v972_v20 = vmul.f32 %v3423_v0, %v4915_v17  ;;  %v973_v62 = vmul.f32 %v3425_v5, %v4915_v17 }
 0x1bd   : > { %v1512_v11 = vmul.f32 %v3594_v21, %v1432_v42  ;;  %v1513_v9 = vmul.f32 %v3596_v16, %v1432_v42  ;;  %v1547_v47 = vadd.f32 %v1483_v12, %v1285_v48  ;;  %v4916_v42 = vld [vmem:[#allocation26_spill] sm:$0xff] }
 0x1bf   : > { %v1576_v26 = vadd.f32 %v1512_v11, %v1314_v32  ;;  %v1577_v1 = vadd.f32 %v1513_v9, %v1315_v8  ;;  %v1611_v29 = vmax.f32 %v1547_v47, 0.0  ;;  %v774_v32 = vadd.f32 %v4916_v42, %v550_v4  ;;  %v2891_v47 = vld [vmem:[%s4768_s1 + $0x88] sm:$0xff] }
 0x1c0   : > { %2870 = vset.pattern.permute.xlu1 %v4876_v33  ;;  %v775_v8 = vadd.f32 %v4916_v42, %v551_v28 }
 0x1c1   : > { %1141 = vperm.xlu1 %2870, %v2888_v10   ;;  %v1368_v22 = vpop.permute.xlu1 %1367  ;;  %v1640_v6 = vmax.f32 %v1576_v26, 0.0  ;;  %v1641_v59 = vmax.f32 %v1577_v1, 0.0  ;;  %v1036_v24 = vadd.f32 %v972_v20, %v774_v32  ;;  %v2890_v1 = vld [vmem:[%s4768_s1 + $0x90] sm:$0xff] }
 0x1c2   : > { %v1480_v36 = vmul.f32 %v3594_v21, %v1368_v22  ;;  %v1481_v3 = vmul.f32 %v3596_v16, %v1368_v22  ;;  %v1037_v12 = vadd.f32 %v973_v62, %v775_v8  ;;  %v4923_v62 = vld [vmem:[#allocation48_spill] sm:$0xff] }
 0x1c3   : > { %1335 = vperm.xlu2 %2869, %v2885_v23   ;;  %v1678_v18 = vpack.c.bf16 %v1642_v60, %v1640_v6  ;;  %v1679_v56 = vpack.c.bf16 %v1643_v35, %v1641_v59  ;;  %v1610_v23 = vmax.f32 %v1546_v45, 0.0  ;;  %v4917_v35 = vld [vmem:[#allocation37_spill] sm:$0xff] }
 0x1c4   : > { %v3950_v57 = vpop.permute.xlu0 %1145  ;;  %v1544_v51 = vadd.f32 %v1480_v36, %v1282_v61  ;;  %v1545_v55 = vadd.f32 %v1481_v3, %v1283_v14  ;;  %v4918_v61 = vld [vmem:[#allocation38_spill] sm:$0xff]  ;;  %v4919_v36 = vld [vmem:[#allocation11_spill] sm:$0xff] }
 0x1c5   : > { %2159 = vmatpush.bf16.msra.mxu1 %v1678_v18  ;;  %2337 = vmatpush.bf16.msra.mxu3 %v1679_v56  ;;  %v3952_v53 = vpop.permute.xlu2 %1165  ;;  %v532_v3 = vmul.f32 %v3384_v39, %v4919_v36  ;;  %v533_v18 = vmul.f32 %v3386_v52, %v4919_v36  ;;  %v4920_v56 = vld [vmem:[#allocation43_spill] sm:$0xff]  ;;  %v2892_v36 = vld [vmem:[%s4768_s1 + $0x80] sm:$0xff] }
 0x1c6   : > { %v1608_v15 = vmax.f32 %v1544_v51, 0.0  ;;  %v1609_v37 = vmax.f32 %v1545_v55, 0.0  ;;  %v954_v45 = vmul.f32 %v3423_v0, %v4920_v56  ;;  %v4921_v55 = vld [vmem:[#allocation21_spill] sm:$0xff] }
 0x1c7   : > { %v756_v2 = vadd.f32 %v4921_v55, %v532_v3  ;;  %v757_v4 = vadd.f32 %v4921_v55, %v533_v18 }
 0x1c8   : > { %v1662_v43 = vpack.c.bf16 %v1610_v23, %v1608_v15  ;;  %v1663_v63 = vpack.c.bf16 %v1611_v29, %v1609_v37  ;;  %v4922_v29 = vld [vmem:[#allocation3_spill] sm:$0xff] }
 0x1c9   : > { %2871 = vset.pattern.permute.xlu1 %v4871_v54  ;;  %v530_v17 = vmul.f32 %v3384_v39, %v4922_v29  ;;  %v531_v20 = vmul.f32 %v3386_v52, %v4922_v29  ;;  %v1018_v42 = vadd.f32 %v954_v45, %v756_v2  ;;  %v4926_v29 = vmov 0  }
 0x1ca   : > { %1339 = vperm.xlu1 %2871, %v3898_v31   ;;  %v3966_v11 = vpop.permute.xlu1 %903  ;;  %2070 = vmatpush.bf16.msra.mxu0 %v1662_v43  ;;  %v952_v43 = vmul.f32 %v3423_v0, %v4923_v62 }
 0x1cb   : > { %2872 = vset.pattern.permute.xlu2 %v4876_v33  ;;  %2248 = vmatpush.bf16.msra.mxu2 %v1663_v63  ;;  %v953_v63 = vmul.f32 %v3425_v5, %v4923_v62 }
 0x1cc   : > { %v1138_v9 = vpop.permute.xlu0 %1137  ;;  %1065 = vperm.xlu2 %2872, %v2889_v19  }
 0x1cd   : > { %v1234_v30 = vmul.f32 %v3590_v25, %v1138_v9  ;;  %v1235_v49 = vmul.f32 %v3592_v44, %v1138_v9 }
 0x1ce   : > { %v1364_v26 = vpop.permute.xlu2 %1363 }
 0x1cf   : > { %v3974_v48 = vadd.f32 %v1234_v30, %v1036_v24  ;;  %v3976_v31 = vadd.f32 %v1235_v49, %v1037_v12  ;;  %v4924_v24 = vld [vmem:[#allocation27_spill] sm:$0xff]  ;;  %v1214_v30 = vmul.f32 %v3590_v25, %v3901_v13  ;;  %v1215_v49 = vmul.f32 %v3592_v44, %v3901_v13 }
 0x1d0   : > { %v754_v12 = vadd.f32 %v4924_v24, %v530_v17  ;;  %v986_v17 = vmul.f32 %v3423_v0, %v3966_v11 }
 0x1d2   : > { %1399 = vperm.xlu1 %2871, %v2890_v1  }
 0x1d3   : > { %v1102_v22 = vpop.permute.xlu1 %1101 }
 0x1d4   : > { %2873 = vset.pattern.permute.xlu2 %v4871_v54  ;;  %v1070_v6 = vpop.permute.xlu0 %1069  ;;  %v1217_v15 = vmul.f32 %v3592_v44, %v1102_v22 }
 0x1d5   : > { %v1200_v60 = vmul.f32 %v3590_v25, %v1070_v6  ;;  %v1201_v59 = vmul.f32 %v3592_v44, %v1070_v6  ;;  %1403 = vperm.xlu2 %2873, %v2888_v10   ;;  %v955_v10 = vmul.f32 %v3425_v5, %v4920_v56  ;;  %v1479_v6 = vmul.f32 %v3596_v16, %v1364_v26 }
 0x1d7   : > { %v3985_v41 = vadd.f32 %v1200_v60, %v4917_v35  ;;  %v3988_v38 = vadd.f32 %v1201_v59, %v4918_v61  ;;  %v3990_v14 = vpop.permute.xlu2 %1093  ;;  %v1019_v32 = vadd.f32 %v955_v10, %v757_v4  ;;  %v1016_v59 = vadd.f32 %v952_v43, %v754_v12  ;;  %v4927_v43 = vld [vmem:[#allocation39_spill] sm:$0xff] }
 0x1d9   : > { %v1281_v60 = vadd.f32 %v1217_v15, %v1019_v32  ;;  %v1278_v35 = vadd.f32 %v1214_v30, %v1016_v59  ;;  %v1248_v32 = vmul.f32 %v3590_v25, %v3952_v53  ;;  %v4928_v59 = vld [vmem:[#allocation9_spill] sm:$0xff] }
 0x1da   : > { %2875 = vset.pattern.permute.xlu1 %v4876_v33  ;;  %v1216_v33 = vmul.f32 %v3590_v25, %v1102_v22  ;;  %v1478_v22 = vmul.f32 %v3594_v21, %v1364_v26 }
 0x1db   : > { %1133 = vperm.xlu1 %2875, %v2891_v47   ;;  %v4004_v51 = vpop.permute.xlu1 %1161  ;;  %v1543_v56 = vadd.f32 %v1479_v6, %v1281_v60 }
 0x1dc   : > { %v1130_v28 = vpop.permute.xlu0 %1129 }
 0x1dd   : > { %v1230_v23 = vmul.f32 %v3590_v25, %v1130_v28  ;;  %v1231_v37 = vmul.f32 %v3592_v44, %v1130_v28  ;;  %1327 = vperm.xlu2 %2873, %v2889_v19   ;;  %v755_v19 = vadd.f32 %v4924_v24, %v531_v20  ;;  %v1607_v28 = vmax.f32 %v1543_v56, 0.0 }
 0x1de   : > { %v987_v20 = vmul.f32 %v3425_v5, %v3966_v11  ;;  %v1249_v24 = vmul.f32 %v3592_v44, %v3952_v53  ;;  %v1246_v11 = vmul.f32 %v3590_v25, %v4004_v51 }
 0x1df   : > { %v4021_v8 = vadd.f32 %v1230_v23, %v3650_v7  ;;  %v4024_v9 = vadd.f32 %v1231_v37, %v3652_v34  ;;  %v1280_v7 = vadd.f32 %v1216_v33, %v1018_v42  ;;  %v1017_v34 = vadd.f32 %v953_v63, %v755_v19  ;;  %v4925_v23 = vld [vmem:[#allocation17_spill] sm:$0xff] }
 0x1e0   : > { %v1428_v1 = vpop.permute.xlu2 %1427  ;;  %v564_v37 = vmul.f32 %v3384_v39, %v4925_v23  ;;  %v1310_v53 = vadd.f32 %v1246_v11, %v3752_v50  ;;  %v527_v50 = vmul.f32 %v3386_v52, %v4928_v59  ;;  %v1730_v11 = vld [vmem:[%s4771_s4 + $0x70] sm:$0xff] }
 0x1e1   : > { %v1279_v61 = vadd.f32 %v1215_v49, %v1017_v34  ;;  %v1542_v26 = vadd.f32 %v1478_v22, %v1280_v7  ;;  %v1247_v49 = vmul.f32 %v3592_v44, %v4004_v51  ;;  %v1510_v22 = vmul.f32 %v3594_v21, %v1428_v1 }
 0x1e2   : > { %v788_v63 = vadd.f32 %v4927_v43, %v564_v37  ;;  %v1511_v6 = vmul.f32 %v3596_v16, %v1428_v1  ;;  %v526_v34 = vmul.f32 %v3384_v39, %v4928_v59 }
 0x1e3   : > { %2876 = vset.pattern.permute.xlu1 %v4871_v54  ;;  %v1606_v2 = vmax.f32 %v1542_v26, 0.0 }
 0x1e4   : > { %1391 = vperm.xlu1 %2876, %v2892_v36   ;;  %v1360_v3 = vpop.permute.xlu1 %1359  ;;  %v1050_v12 = vadd.f32 %v986_v17, %v788_v63  ;;  %v1209_v63 = vmul.f32 %v3592_v44, %v3932_v27 }
 0x1e5   : > { %v1476_v13 = vmul.f32 %v3594_v21, %v1360_v3  ;;  %v1477_v18 = vmul.f32 %v3596_v16, %v1360_v3  ;;  %1395 = vperm.xlu2 %2873, %v2891_v47   ;;  %v565_v47 = vmul.f32 %v3386_v52, %v4925_v23 }
 0x1e6   : > { %v1312_v7 = vadd.f32 %v1248_v32, %v1050_v12 }
 0x1e7   : > { %v1540_v45 = vadd.f32 %v1476_v13, %v1278_v35  ;;  %v1541_v10 = vadd.f32 %v1477_v18, %v1279_v61  ;;  %v789_v42 = vadd.f32 %v4927_v43, %v565_v47  ;;  %v1311_v35 = vadd.f32 %v1247_v49, %v3754_v40  ;;  %v4929_v18 = vld [vmem:[#allocation2_spill] sm:$0xff]  ;;  %v4932_v47 = vld [vmem:[#allocation25_spill] sm:$0xff] }
 0x1e8   : > { %v4040_v55 = vpop.permute.xlu2 %1351  ;;  %v1574_v36 = vadd.f32 %v1510_v22, %v1312_v7  ;;  %v524_v26 = vmul.f32 %v3384_v39, %v4929_v18  ;;  %v525_v1 = vmul.f32 %v3386_v52, %v4929_v18  ;;  %v1208_v43 = vmul.f32 %v3590_v25, %v3932_v27 }
 0x1e9   : > { %v1604_v54 = vmax.f32 %v1540_v45, 0.0  ;;  %v1605_v4 = vmax.f32 %v1541_v10, 0.0  ;;  %v1051_v19 = vadd.f32 %v987_v20, %v789_v42  ;;  %v4930_v10 = vld [vmem:[#allocation19_spill] sm:$0xff]  ;;  %v4933_v42 = vld [vmem:[#allocation42_spill] sm:$0xff] }
 0x1ea   : > { %v750_v40 = vadd.f32 %v4930_v10, %v526_v34  ;;  %v1638_v23 = vmax.f32 %v1574_v36, 0.0  ;;  %v748_v17 = vadd.f32 %v4932_v47, %v524_v26  ;;  %v749_v20 = vadd.f32 %v4932_v47, %v525_v1 }
 0x1eb   : > { %v1660_v33 = vpack.c.bf16 %v1606_v2, %v1604_v54  ;;  %v1661_v15 = vpack.c.bf16 %v1607_v28, %v1605_v4  ;;  %v1313_v60 = vadd.f32 %v1249_v24, %v1051_v19  ;;  %v4931_v54 = vld [vmem:[#allocation46_spill] sm:$0xff]  ;;  %v948_v32 = vmul.f32 %v3423_v0, %v4933_v42 }
 0x1ec   : > { %2877 = vset.pattern.permute.xlu1 %v4926_v29  ;;  %v946_v2 = vmul.f32 %v3423_v0, %v4931_v54  ;;  %v947_v4 = vmul.f32 %v3425_v5, %v4931_v54  ;;  %v949_v24 = vmul.f32 %v3425_v5, %v4933_v42  ;;  %v751_v27 = vadd.f32 %v4930_v10, %v527_v50  ;;  %v4935_v10 = vld [vmem:[#allocation40_spill] sm:$0xff]  ;;  %v4938_v42 = vld [vmem:[#allocation53_spill] sm:$0xff] }
 0x1ed   : > { %v1090_v62 = vpop.permute.xlu1 %1089  ;;  %2071 = vmatpush.bf16.msra.mxu0 %v1660_v33  ;;  %2249 = vmatpush.bf16.msra.mxu2 %v1661_v15  ;;  %v1575_v3 = vadd.f32 %v1511_v6, %v1313_v60  ;;  %v1348_v33 = vpop.permute.xlu0 %1347  ;;  %v1012_v18 = vadd.f32 %v948_v32, %v750_v40  ;;  %v1213_v1 = vmul.f32 %v3592_v44, %v3990_v14 }
 0x1ee   : > { %2878 = vset.pattern.permute.xlu2 %v4926_v29  ;;  %v1010_v49 = vadd.f32 %v946_v2, %v748_v17  ;;  %v1011_v22 = vadd.f32 %v947_v4, %v749_v20  ;;  %v1470_v6 = vmul.f32 %v3594_v21, %v1348_v33  ;;  %v1471_v7 = vmul.f32 %v3596_v16, %v1348_v33 }
 0x1ef   : > { %v1639_v29 = vmax.f32 %v1575_v3, 0.0  ;;  %1820 = vperm.xlu1 %2877, %v1730_v11   ;;  %v1211_v36 = vmul.f32 %v3592_v44, %v1090_v62  ;;  %v4934_v3 = vld [vmem:[#allocation12_spill] sm:$0xff]  ;;  %v1013_v26 = vadd.f32 %v949_v24, %v751_v27  ;;  %v1472_v40 = vmul.f32 %v3594_v21, %v4040_v55  ;;  %v4939_v24 = vld [vmem:[#allocation54_spill] sm:$0xff] }
 0x1f1   : > { %v1082_v30 = vpop.permute.xlu2 %1081 }
 0x1f2   : > { %v1206_v60 = vmul.f32 %v3590_v25, %v1082_v30  ;;  %v1207_v59 = vmul.f32 %v3592_v44, %v1082_v30  ;;  %v1212_v30 = vmul.f32 %v3590_v25, %v3990_v14  ;;  %v4937_v14 = vld [vmem:[#allocation36_spill] sm:$0xff] }
 0x1f4   : > { %v1270_v54 = vadd.f32 %v1206_v60, %v4935_v10  ;;  %v1276_v32 = vadd.f32 %v1212_v30, %v4938_v42 }
 0x1f6   : > { %v1424_v61 = vpop.permute.xlu1 %1423 }
 0x1f7   : > { %v1508_v13 = vmul.f32 %v3594_v21, %v1424_v61  ;;  %v1509_v51 = vmul.f32 %v3596_v16, %v1424_v61  ;;  %v1210_v61 = vmul.f32 %v3590_v25, %v1090_v62  ;;  %v4936_v62 = vld [vmem:[#allocation41_spill] sm:$0xff] }
 0x1f8   : > { %v1271_v2 = vadd.f32 %v1207_v59, %v4936_v62 }
 0x1f9   : > { %v1572_v56 = vadd.f32 %v1508_v13, %v1310_v53  ;;  %v1573_v45 = vadd.f32 %v1509_v51, %v1311_v35  ;;  %v1272_v53 = vadd.f32 %v1208_v43, %v1010_v49  ;;  %v1273_v35 = vadd.f32 %v1209_v63, %v1011_v22 }
 0x1fa   : > { %v560_v13 = vmul.f32 %v3384_v39, %v4934_v3  ;;  %v561_v51 = vmul.f32 %v3386_v52, %v4934_v3  ;;  %v982_v43 = vmul.f32 %v3423_v0, %v3797_v58  ;;  %v983_v63 = vmul.f32 %v3425_v5, %v3797_v58 }
 0x1fb   : > { %v4081_v28 = vpop.permute.xlu2 %1419  ;;  %v1636_v15 = vmax.f32 %v1572_v56, 0.0  ;;  %v1637_v37 = vmax.f32 %v1573_v45, 0.0  ;;  %v1534_v56 = vadd.f32 %v1470_v6, %v1272_v53  ;;  %v1535_v45 = vadd.f32 %v1471_v7, %v1273_v35 }
 0x1fc   : > { %v785_v47 = vadd.f32 %v4937_v14, %v561_v51 }
 0x1fd   : > { %v1676_v12 = vpack.c.bf16 %v1638_v23, %v1636_v15  ;;  %v1677_v19 = vpack.c.bf16 %v1639_v29, %v1637_v37  ;;  %v1473_v15 = vmul.f32 %v3596_v16, %v4040_v55  ;;  %v1274_v23 = vadd.f32 %v1210_v61, %v1012_v18  ;;  %v1747_v61 = vld [vmem:[%s4771_s4 + $0xf8] sm:$0xff] }
 0x1fe   : > { %v1275_v37 = vadd.f32 %v1211_v36, %v1013_v26  ;;  %v784_v29 = vadd.f32 %v4937_v14, %v560_v13  ;;  %v1598_v55 = vmax.f32 %v1534_v56, 0.0  ;;  %v1599_v49 = vmax.f32 %v1535_v45, 0.0  ;;  %1905 = vperm.xlu1 %2877, %v1747_v61   ;;  %v1729_v14 = vld [vmem:[%s4771_s4 + $0x68] sm:$0xff] }
 0x1ff   : > { %v1158_v34 = vpop.permute.xlu1 %1157  ;;  %2160 = vmatpush.bf16.msra.mxu1 %v1676_v12  ;;  %2338 = vmatpush.bf16.msra.mxu3 %v1677_v19  ;;  %v1277_v12 = vadd.f32 %v1213_v1, %v4939_v24  ;;  %v1536_v27 = vadd.f32 %v1472_v40, %v1274_v23  ;;  %v1047_v3 = vadd.f32 %v983_v63, %v785_v47  ;;  %v4941_v40 = vld [vmem:[#allocation61_spill] sm:$0xff] }
 0x200   : > { %v1244_v22 = vmul.f32 %v3590_v25, %v1158_v34  ;;  %v1245_v6 = vmul.f32 %v3592_v44, %v1158_v34  ;;  %v1537_v60 = vadd.f32 %v1473_v15, %v1275_v37  ;;  %v1046_v36 = vadd.f32 %v982_v43, %v784_v29  ;;  %v1746_v29 = vld [vmem:[%s4771_s4 + $0xf0] sm:$0xff] }
 0x201   : > { %v1242_v13 = vmul.f32 %v3590_v25, %v3903_v46  ;;  %v1243_v34 = vmul.f32 %v3592_v44, %v3903_v46  ;;  %v1506_v26 = vmul.f32 %v3594_v21, %v4081_v28  ;;  %v1600_v56 = vmax.f32 %v1536_v27, 0.0  ;;  %1900 = vperm.xlu0 %2879, %v1746_v29   ;;  %v1742_v27 = vld [vmem:[%s4771_s4 + $0xd0] sm:$0xff] }
 0x202   : > { %v1308_v30 = vadd.f32 %v1244_v22, %v1046_v36  ;;  %v1601_v45 = vmax.f32 %v1537_v60, 0.0  ;;  %v1309_v10 = vadd.f32 %v1245_v6, %v1047_v3  ;;  %v1745_v22 = vld [vmem:[%s4771_s4 + $0xe8] sm:$0xff] }
 0x203   : > { %v1344_v50 = vpop.permute.xlu2 %1343  ;;  %v1307_v15 = vadd.f32 %v1243_v34, %v4941_v40  ;;  %v4943_v36 = vld [vmem:[#allocation55_spill] sm:$0xff] }
 0x204   : > { %v1468_v4 = vmul.f32 %v3594_v21, %v1344_v50  ;;  %v1469_v33 = vmul.f32 %v3596_v16, %v1344_v50  ;;  %v1507_v50 = vmul.f32 %v3596_v16, %v4081_v28  ;;  %v1570_v37 = vadd.f32 %v1506_v26, %v1308_v30  ;;  %v4944_v34 = vld [vmem:[#allocation35_spill] sm:$0xff] }
 0x205   : > { %v976_v3 = vmul.f32 %v3423_v0, %v4943_v36  ;;  %v1238_v26 = vmul.f32 %v3590_v25, %v3950_v57  ;;  %v1239_v30 = vmul.f32 %v3592_v44, %v3950_v57  ;;  %v4947_v57 = vld [vmem:[#allocation6_spill] sm:$0xff] }
 0x206   : > { %v1532_v17 = vadd.f32 %v1468_v4, %v1270_v54  ;;  %v1533_v20 = vadd.f32 %v1469_v33, %v1271_v2  ;;  %v4940_v33 = vld [vmem:[#allocation60_spill] sm:$0xff]  ;;  %1815 = vperm.xlu1 %2877, %v1729_v14  }
 0x207   : > { %v1306_v46 = vadd.f32 %v1242_v13, %v4940_v33  ;;  %v977_v13 = vmul.f32 %v3425_v5, %v4943_v36  ;;  %v1725_v33 = vld [vmem:[%s4771_s4 + $0x48] sm:$0xff] }
 0x208   : > { %v1596_v19 = vmax.f32 %v1532_v17, 0.0  ;;  %v1597_v11 = vmax.f32 %v1533_v20, 0.0  ;;  %v1356_v7 = vpop.permute.xlu1 %1355  ;;  %v1571_v17 = vadd.f32 %v1507_v50, %v1309_v10  ;;  %v4945_v10 = vld [vmem:[#allocation49_spill] sm:$0xff] }
 0x209   : > { %v1474_v59 = vmul.f32 %v3594_v21, %v1356_v7  ;;  %v1475_v53 = vmul.f32 %v3596_v16, %v1356_v7  ;;  %1895 = vperm.xlu0 %2879, %v1745_v22   ;;  %v1743_v7 = vld [vmem:[%s4771_s4 + $0xd8] sm:$0xff]  ;;  %v1332_v22 = vpop.permute.xlu0 %1331 }
 0x20a   : > { %v1656_v58 = vpack.c.bf16 %v1598_v55, %v1596_v19  ;;  %v1657_v35 = vpack.c.bf16 %v1599_v49, %v1597_v11  ;;  %v1726_v49 = vld [vmem:[%s4771_s4 + $0x50] sm:$0xff] }
 0x20b   : > { %v1538_v51 = vadd.f32 %v1474_v59, %v1276_v32  ;;  %v1539_v18 = vadd.f32 %v1475_v53, %v1277_v12  ;;  %v1634_v32 = vmax.f32 %v1570_v37, 0.0  ;;  %v1635_v12 = vmax.f32 %v1571_v17, 0.0 }
 0x20c   : > { %v4140_v1 = vpop.permute.xlu2 %1077 }
 0x20d   : > { %v1602_v54 = vmax.f32 %v1538_v51, 0.0  ;;  %v1603_v62 = vmax.f32 %v1539_v18, 0.0 }
 0x20e   : > { %1800 = vperm.xlu1 %2877, %v1726_v49  }
 0x20f   : > { %v1658_v2 = vpack.c.bf16 %v1602_v54, %v1600_v56  ;;  %v1659_v4 = vpack.c.bf16 %v1603_v62, %v1601_v45  ;;  %v4946_v62 = vld [vmem:[#allocation50_spill] sm:$0xff] }
 0x210   : > { %v1416_v23 = vpop.permute.xlu1 %1415 }
 0x211   : > { %v1504_v28 = vmul.f32 %v3594_v21, %v1416_v23  ;;  %v1505_v47 = vmul.f32 %v3596_v16, %v1416_v23  ;;  %2072 = vmatpush.bf16.msra.mxu0 %v1658_v2  ;;  %2250 = vmatpush.bf16.msra.mxu2 %v1659_v4  ;;  %v1740_v4 = vld [vmem:[%s4771_s4 + $0xc0] sm:$0xff] }
 0x212   : > { %1880 = vperm.xlu0 %2879, %v1742_v27  }
 0x213   : > { %v1568_v20 = vadd.f32 %v1504_v28, %v1306_v46  ;;  %v1569_v43 = vadd.f32 %v1505_v47, %v1307_v15  ;;  %v514_v15 = vmul.f32 %v3384_v39, %v4947_v57 }
 0x215   : > { %v1412_v63 = vpop.permute.xlu2 %1411  ;;  %2073 = vmatpush.bf16.msra.mxu0 %v1656_v58  ;;  %2251 = vmatpush.bf16.msra.mxu2 %v1657_v35  ;;  %v1632_v42 = vmax.f32 %v1568_v20, 0.0  ;;  %v1633_v24 = vmax.f32 %v1569_v43, 0.0  ;;  %v4942_v58 = vld [vmem:[#allocation10_spill] sm:$0xff]  ;;  %v515_v20 = vmul.f32 %v3386_v52, %v4947_v57  ;;  %v4948_v43 = vld [vmem:[#allocation5_spill] sm:$0xff] }
 0x216   : > { %1885 = vperm.xlu1 %2877, %v1743_v7   ;;  %v554_v35 = vmul.f32 %v3384_v39, %v4942_v58  ;;  %v555_v61 = vmul.f32 %v3386_v52, %v4942_v58  ;;  %v1502_v45 = vmul.f32 %v3594_v21, %v1412_v63  ;;  %v1503_v50 = vmul.f32 %v3596_v16, %v1412_v63 }
 0x217   : > { %v1674_v19 = vpack.c.bf16 %v1634_v32, %v1632_v42  ;;  %v1675_v55 = vpack.c.bf16 %v1635_v12, %v1633_v24  ;;  %v518_v63 = vmul.f32 %v3384_v39, %v4948_v43  ;;  %v519_v24 = vmul.f32 %v3386_v52, %v4948_v43  ;;  %v4949_v12 = vld [vmem:[#allocation7_spill] sm:$0xff] }
 0x218   : > { %v778_v51 = vadd.f32 %v4944_v34, %v554_v35  ;;  %v779_v18 = vadd.f32 %v4944_v34, %v555_v61  ;;  %v4951_v61 = vld [vmem:[#allocation16_spill] sm:$0xff] }
 0x219   : > { %v1150_v11 = vpop.permute.xlu1 %1149  ;;  %2161 = vmatpush.bf16.msra.mxu1 %v1674_v19  ;;  %2339 = vmatpush.bf16.msra.mxu3 %v1675_v55  ;;  %v520_v19 = vmul.f32 %v3384_v39, %v4949_v12  ;;  %v521_v55 = vmul.f32 %v3386_v52, %v4949_v12 }
 0x21a   : > { %v1240_v59 = vmul.f32 %v3590_v25, %v1150_v11  ;;  %v1241_v53 = vmul.f32 %v3592_v44, %v1150_v11  ;;  %v1040_v46 = vadd.f32 %v976_v3, %v778_v51  ;;  %v1041_v40 = vadd.f32 %v977_v13, %v779_v18  ;;  %1795 = vperm.xlu0 %2879, %v1725_v33   ;;  %v4950_v11 = vld [vmem:[#allocation15_spill] sm:$0xff]  ;;  %v4952_v3 = vld [vmem:[#allocation44_spill] sm:$0xff]  ;;  %v1723_v51 = vld [vmem:[%s4771_s4 + $0x38] sm:$0xff] }
 0x21b   : > { %v738_v49 = vadd.f32 %v4950_v11, %v514_v15  ;;  %v739_v35 = vadd.f32 %v4950_v11, %v515_v20  ;;  %v744_v36 = vadd.f32 %v4951_v61, %v520_v19  ;;  %v936_v13 = vmul.f32 %v3423_v0, %v4952_v3  ;;  %v1722_v18 = vld [vmem:[%s4771_s4 + $0x30] sm:$0xff] }
 0x21c   : > { %v1304_v54 = vadd.f32 %v1240_v59, %v4945_v10  ;;  %v1305_v2 = vadd.f32 %v1241_v53, %v4946_v62  ;;  %v1302_v23 = vadd.f32 %v1238_v26, %v1040_v46  ;;  %v1303_v37 = vadd.f32 %v1239_v30, %v1041_v40  ;;  %v4953_v26 = vld [vmem:[#allocation51_spill] sm:$0xff] }
 0x21d   : > { %v4160_v6 = vpop.permute.xlu2 %1335  ;;  %v937_v34 = vmul.f32 %v3425_v5, %v4952_v3  ;;  %v940_v30 = vmul.f32 %v3423_v0, %v4953_v26  ;;  %v745_v15 = vadd.f32 %v4951_v61, %v521_v55 }
 0x21e   : > { %1870 = vperm.xlu1 %2877, %v1740_v4   ;;  %v1566_v47 = vadd.f32 %v1502_v45, %v1304_v54  ;;  %v1567_v17 = vadd.f32 %v1503_v50, %v1305_v2  ;;  %v941_v45 = vmul.f32 %v3425_v5, %v4953_v26  ;;  %v4954_v54 = vld [vmem:[#allocation24_spill] sm:$0xff]  ;;  %v1462_v2 = vmul.f32 %v3594_v21, %v1332_v22 }
 0x21f   : > { %v742_v62 = vadd.f32 %v4954_v54, %v518_v63  ;;  %v1463_v4 = vmul.f32 %v3596_v16, %v1332_v22  ;;  %v743_v33 = vadd.f32 %v4954_v54, %v519_v24 }
 0x220   : > { %v1630_v59 = vmax.f32 %v1566_v47, 0.0  ;;  %v1631_v58 = vmax.f32 %v1567_v17, 0.0 }
 0x221   : > { %v4168_v60 = vpop.permute.xlu1 %1073  ;;  %v1004_v17 = vadd.f32 %v940_v30, %v742_v62  ;;  %v1005_v20 = vadd.f32 %v941_v45, %v743_v33  ;;  %v1527_v63 = vadd.f32 %v1463_v4, %v3988_v38  ;;  %v1205_v38 = vmul.f32 %v3592_v44, %v4140_v1  ;;  %v1728_v33 = vld [vmem:[%s4771_s4 + $0x60] sm:$0xff] }
 0x222   : > { %1780 = vperm.xlu0 %2879, %v1722_v18   ;;  %v1202_v46 = vmul.f32 %v3590_v25, %v4168_v60  ;;  %v1203_v40 = vmul.f32 %v3592_v44, %v4168_v60  ;;  %v1526_v60 = vadd.f32 %v1462_v2, %v3985_v41 }
 0x223   : > { %v1591_v3 = vmax.f32 %v1527_v63, 0.0 }
 0x224   : > { %v1266_v24 = vadd.f32 %v1202_v46, %v1004_v17  ;;  %v1267_v12 = vadd.f32 %v1203_v40, %v1005_v20  ;;  %v1737_v46 = vld [vmem:[%s4771_s4 + $0xa8] sm:$0xff] }
 0x226   : > { %v1066_v56 = vpop.permute.xlu2 %1065  ;;  %1785 = vperm.xlu1 %2877, %v1723_v51  }
 0x22a   : > { %v1408_v14 = vpop.permute.xlu1 %1407 }
 0x22b   : > { %v1500_v29 = vmul.f32 %v3594_v21, %v1408_v14  ;;  %v1501_v28 = vmul.f32 %v3596_v16, %v1408_v14  ;;  %v1199_v14 = vmul.f32 %v3592_v44, %v1066_v56 }
 0x22d   : > { %v1564_v42 = vadd.f32 %v1500_v29, %v1302_v23  ;;  %v1565_v32 = vadd.f32 %v1501_v28, %v1303_v37  ;;  %v1000_v23 = vadd.f32 %v936_v13, %v738_v49  ;;  %v1198_v37 = vmul.f32 %v3590_v25, %v1066_v56  ;;  %v4955_v28 = vld [vmem:[#allocation45_spill] sm:$0xff] }
 0x22e   : > { %v1001_v29 = vadd.f32 %v937_v34, %v739_v35  ;;  %v942_v47 = vmul.f32 %v3423_v0, %v4955_v28  ;;  %v943_v43 = vmul.f32 %v3425_v5, %v4955_v28  ;;  %v1465_v56 = vmul.f32 %v3596_v16, %v4160_v6  ;;  %v4957_v28 = vld [vmem:[#allocation59_spill] sm:$0xff] }
 0x22f   : > { %v4211_v7 = vpop.permute.xlu2 %1403  ;;  %v1628_v27 = vmax.f32 %v1564_v42, 0.0  ;;  %v1629_v53 = vmax.f32 %v1565_v32, 0.0  ;;  %v1204_v42 = vmul.f32 %v3590_v25, %v4140_v1  ;;  %v1464_v32 = vmul.f32 %v3594_v21, %v4160_v6  ;;  %v1720_v6 = vld [vmem:[%s4771_s4 + $0x20] sm:$0xff] }
 0x230   : > { %v1262_v55 = vadd.f32 %v1198_v37, %v1000_v23  ;;  %v1263_v11 = vadd.f32 %v1199_v14, %v1001_v29  ;;  %v1006_v22 = vadd.f32 %v942_v47, %v744_v36  ;;  %1770 = vperm.xlu1 %2877, %v1720_v6   ;;  %v1590_v1 = vmax.f32 %v1526_v60, 0.0  ;;  %v1736_v14 = vld [vmem:[%s4771_s4 + $0xa0] sm:$0xff] }
 0x231   : > { %v1672_v50 = vpack.c.bf16 %v1630_v59, %v1628_v27  ;;  %v1673_v10 = vpack.c.bf16 %v1631_v58, %v1629_v53  ;;  %v1731_v27 = vld [vmem:[%s4771_s4 + $0x78] sm:$0xff]  ;;  %v1007_v53 = vadd.f32 %v943_v43, %v745_v15  ;;  %v1528_v36 = vadd.f32 %v1464_v32, %v1266_v24 }
 0x232   : > { %v1739_v59 = vld [vmem:[%s4771_s4 + $0xb8] sm:$0xff]  ;;  %1825 = vperm.xlu2 %2878, %v1731_v27   ;;  %v1268_v61 = vadd.f32 %v1204_v42, %v1006_v22  ;;  %v1529_v51 = vadd.f32 %v1465_v56, %v1267_v12  ;;  %v1498_v40 = vmul.f32 %v3594_v21, %v4211_v7  ;;  %v1499_v29 = vmul.f32 %v3596_v16, %v4211_v7  ;;  %v2655_v7 = vld [vmem:[%s4770_s3] sm:$0xf]  ;;  %v2784_v12 = vld [vmem:[%s4770_s3 + $0x4] sm:$0xf0] }
 0x233   : > { %v1142_v57 = vpop.permute.xlu1 %1141  ;;  %2162 = vmatpush.bf16.msra.mxu1 %v1672_v50  ;;  %2340 = vmatpush.bf16.msra.mxu3 %v1673_v10  ;;  %v1269_v30 = vadd.f32 %v1205_v38, %v1007_v53  ;;  %v1592_v23 = vmax.f32 %v1528_v36, 0.0  ;;  %v1719_v22 = vld [vmem:[%s4771_s4 + $0x18] sm:$0xff]  ;;  %v4958_v53 = vld [vmem:[#allocation8_spill] sm:$0xff] }
 0x234   : > { %1865 = vperm.xlu0 %2879, %v1739_v59   ;;  %v1236_v13 = vmul.f32 %v3590_v25, %v1142_v57  ;;  %v1237_v45 = vmul.f32 %v3592_v44, %v1142_v57  ;;  %v4956_v57 = vld [vmem:[#allocation58_spill] sm:$0xff]  ;;  %v1593_v37 = vmax.f32 %v1529_v51, 0.0 }
 0x236   : > { %v1300_v15 = vadd.f32 %v1236_v13, %v4956_v57  ;;  %v1301_v47 = vadd.f32 %v1237_v45, %v4957_v28  ;;  %v4960_v13 = vld [vmem:[#allocation34_spill] sm:$0xff] }
 0x237   : > { %v1328_v19 = vpop.permute.xlu2 %1327  ;;  %v1724_v57 = vld [vmem:[%s4771_s4 + $0x40] sm:$0xff] }
 0x238   : > { %v1460_v49 = vmul.f32 %v3594_v21, %v1328_v19  ;;  %v1461_v41 = vmul.f32 %v3596_v16, %v1328_v19  ;;  %1855 = vperm.xlu1 %2877, %v1737_v46   ;;  %v1562_v42 = vadd.f32 %v1498_v40, %v1300_v15  ;;  %v1563_v24 = vadd.f32 %v1499_v29, %v1301_v47  ;;  %v2657_v47 = vld [vmem:[%s4770_s3 + $0x8] sm:$0xf0] }
 0x23a   : > { %v1524_v58 = vadd.f32 %v1460_v49, %v1262_v55  ;;  %v1525_v35 = vadd.f32 %v1461_v41, %v1263_v11  ;;  %1810 = vperm.xlu2 %2878, %v1728_v33   ;;  %v1744_v11 = vld [vmem:[%s4771_s4 + $0xe0] sm:$0xff]  ;;  %v1734_v49 = vld [vmem:[%s4771_s4 + $0x90] sm:$0xff]  ;;  %v2656_v41 = vor.u32 %v2784_v12, %v2655_v7  ;;  %v1626_v27 = vmax.f32 %v1562_v42, 0.0  ;;  %v1721_v7 = vld [vmem:[%s4771_s4 + $0x28] sm:$0xff] }
 0x23b   : > { %v1627_v6 = vmax.f32 %v1563_v24, 0.0  ;;  %v1738_v42 = vld [vmem:[%s4771_s4 + $0xb0] sm:$0xff] }
 0x23c   : > { %v1340_v34 = vpop.permute.xlu1 %1339  ;;  %v1588_v18 = vmax.f32 %v1524_v58, 0.0  ;;  %v1589_v26 = vmax.f32 %v1525_v35, 0.0  ;;  %1850 = vperm.xlu0 %2879, %v1736_v14   ;;  %v548_v58 = vmul.f32 %v3384_v39, %v4958_v53  ;;  %v549_v35 = vmul.f32 %v3386_v52, %v4958_v53  ;;  %v1727_v52 = vld [vmem:[%s4771_s4 + $0x58] sm:$0xff]  ;;  %v2783_v14 = vld [vmem:[%s4770_s3 + $0x4] sm:$0xf] }
 0x23d   : > { %v1466_v50 = vmul.f32 %v3594_v21, %v1340_v34  ;;  %v1467_v10 = vmul.f32 %v3596_v16, %v1340_v34  ;;  %v2679_v12 = vld [vmem:[%s4770_s3 + $0x30] sm:$0xf]  ;;  %v2681_v53 = vld [vmem:[%s4770_s3 + $0x38] sm:$0xf0] }
 0x23e   : > { %v1652_v54 = vpack.c.bf16 %v1590_v1, %v1588_v18  ;;  %v1653_v62 = vpack.c.bf16 %v1591_v3, %v1589_v26  ;;  %v772_v34 = vadd.f32 %v4960_v13, %v548_v58  ;;  %v773_v51 = vadd.f32 %v4960_v13, %v549_v35 }
 0x23f   : > { %v1530_v2 = vadd.f32 %v1466_v50, %v1268_v61  ;;  %v1531_v4 = vadd.f32 %v1467_v10, %v1269_v30  ;;  %v4959_v61 = vld [vmem:[#allocation52_spill] sm:$0xff]  ;;  %v1396_v45 = vpop.permute.xlu2 %1395 }
 0x240   : > { %1840 = vperm.xlu1 %2877, %v1734_v49   ;;  %v970_v36 = vmul.f32 %v3423_v0, %v4959_v61  ;;  %v971_v1 = vmul.f32 %v3425_v5, %v4959_v61  ;;  %v1717_v0 = vld [vmem:[%s4771_s4 + $0x8] sm:$0xff]  ;;  %v1716_v5 = vld [vmem:[%s4771_s4] sm:$0xff]  ;;  %v1495_v10 = vmul.f32 %v3596_v16, %v1396_v45 }
 0x241   : > { %v1594_v17 = vmax.f32 %v1530_v2, 0.0  ;;  %v1595_v20 = vmax.f32 %v1531_v4, 0.0  ;;  %v2787_v49 = vld [vmem:[%s4770_s3 + $0x24] sm:$0xf] }
 0x242   : > { %1890 = vperm.xlu2 %2878, %v1744_v11   ;;  %v1034_v26 = vadd.f32 %v970_v36, %v772_v34  ;;  %v1035_v30 = vadd.f32 %v971_v1, %v773_v51  ;;  %v1718_v11 = vld [vmem:[%s4771_s4 + $0x10] sm:$0xff]  ;;  %v2794_v1 = vld [vmem:[%s4770_s3 + $0x54] sm:$0xf0]  ;;  %v2791_v34 = vld [vmem:[%s4770_s3 + $0x44] sm:$0xf] }
 0x243   : > { %v1654_v43 = vpack.c.bf16 %v1594_v17, %v1592_v23  ;;  %v1655_v60 = vpack.c.bf16 %v1595_v20, %v1593_v37  ;;  %v2695_v36 = vld [vmem:[%s4770_s3 + $0x50] sm:$0xf]  ;;  %v2689_v51 = vld [vmem:[%s4770_s3 + $0x48] sm:$0xf0] }
 0x244   : > { %v1400_v63 = vpop.permute.xlu1 %1399  ;;  %1765 = vperm.xlu0 %2879, %v1719_v22   ;;  %v2696_v13 = vor.u32 %v2794_v1, %v2695_v36 }
 0x245   : > { %v1496_v32 = vmul.f32 %v3594_v21, %v1400_v63  ;;  %v1497_v56 = vmul.f32 %v3596_v16, %v1400_v63  ;;  %2074 = vmatpush.bf16.msra.mxu0 %v1654_v43  ;;  %2252 = vmatpush.bf16.msra.mxu2 %v1655_v60  ;;  %v2671_v43 = vld [vmem:[%s4770_s3 + $0x20] sm:$0xf]  ;;  %v2788_v60 = vld [vmem:[%s4770_s3 + $0x24] sm:$0xf0] }
 0x246   : > { %v2672_v63 = vor.u32 %v2788_v60, %v2671_v43  ;;  %v2713_v43 = vld [vmem:[%s4770_s3 + $0x78] sm:$0xf0] }
 0x247   : > { %v1560_v19 = vadd.f32 %v1496_v32, %v3974_v48  ;;  %v1561_v55 = vadd.f32 %v1497_v56, %v3976_v31  ;;  %v2785_v32 = vld [vmem:[%s4770_s3 + $0x14] sm:$0xf]  ;;  %v2665_v56 = vld [vmem:[%s4770_s3 + $0x18] sm:$0xf0] }
 0x248   : > { %1755 = vperm.xlu1 %2877, %v1717_v0   ;;  %v2668_v24 = vor.u32 %v2785_v32, %v2665_v56  ;;  %v1733_v56 = vld [vmem:[%s4771_s4 + $0x88] sm:$0xff] }
 0x249   : > { %2075 = vmatpush.bf16.msra.mxu0 %v1652_v54  ;;  %2253 = vmatpush.bf16.msra.mxu2 %v1653_v62  ;;  %v1624_v38 = vmax.f32 %v1560_v19, 0.0  ;;  %v1625_v48 = vmax.f32 %v1561_v55, 0.0  ;;  %v2663_v54 = vld [vmem:[%s4770_s3 + $0x10] sm:$0xf]  ;;  %v2786_v62 = vld [vmem:[%s4770_s3 + $0x14] sm:$0xf0] }
 0x24a   : > { %1805 = vperm.xlu2 %2878, %v1727_v52   ;;  %v2664_v15 = vor.u32 %v2786_v62, %v2663_v54  ;;  %v2790_v19 = vld [vmem:[%s4770_s3 + $0x34] sm:$0xf0]  ;;  %v2692_v52 = vor.u32 %v2791_v34, %v2689_v51 }
 0x24b   : > { %v1670_v31 = vpack.c.bf16 %v1626_v27, %v1624_v38  ;;  %v1671_v59 = vpack.c.bf16 %v1627_v6, %v1625_v48  ;;  %v2680_v55 = vor.u32 %v2790_v19, %v2679_v12  ;;  %v2687_v27 = vld [vmem:[%s4770_s3 + $0x40] sm:$0xf]  ;;  %v2792_v48 = vld [vmem:[%s4770_s3 + $0x44] sm:$0xf0]  ;;  %v2727_v12 = vld [vmem:[%s4770_s3 + $0x90] sm:$0xf] }
 0x24c   : > { %2254 = vmatmul.bf16.vlgmr.msra.gmra.mxu2 %v2656_v41  ;;  %2076 = vmatmul.bf16.vlgmr.msra.gmra.mxu0 %v2656_v41  ;;  %v2673_v41 = vld [vmem:[%s4770_s3 + $0x28] sm:$0xf0]  ;;  %v2688_v6 = vor.u32 %v2792_v48, %v2687_v27  ;;  %v2802_v19 = vld [vmem:[%s4770_s3 + $0x94] sm:$0xf0]  ;;  %v2799_v27 = vld [vmem:[%s4770_s3 + $0x84] sm:$0xf] }
 0x24d   : > { %v1134_v3 = vpop.permute.xlu1 %1133  ;;  %2163 = vmatpush.bf16.msra.mxu1 %v1670_v31  ;;  %2341 = vmatpush.bf16.msra.mxu3 %v1671_v59  ;;  %v2676_v22 = vor.u32 %v2787_v49, %v2673_v41  ;;  %v2789_v59 = vld [vmem:[%s4770_s3 + $0x34] sm:$0xf]  ;;  %v2728_v49 = vor.u32 %v2802_v19, %v2727_v12  ;;  %v2721_v48 = vld [vmem:[%s4770_s3 + $0x88] sm:$0xf0]  ;;  %v1735_v51 = vld [vmem:[%s4771_s4 + $0x98] sm:$0xff] }
 0x24e   : > { %v1232_v39 = vmul.f32 %v3590_v25, %v1134_v3  ;;  %v1233_v18 = vmul.f32 %v3592_v44, %v1134_v3  ;;  %1750 = vperm.xlu0 %2879, %v1716_v5   ;;  %v1494_v44 = vmul.f32 %v3594_v21, %v1396_v45  ;;  %v2684_v35 = vor.u32 %v2789_v59, %v2681_v53  ;;  %v2703_v5 = vld [vmem:[%s4770_s3 + $0x60] sm:$0xf] }
 0x24f   : > { %v2724_v53 = vor.u32 %v2799_v27, %v2721_v48 }
 0x250   : > { %v1296_v25 = vadd.f32 %v1232_v39, %v1034_v26  ;;  %v1297_v50 = vadd.f32 %v1233_v18, %v1035_v30  ;;  %v2796_v26 = vld [vmem:[%s4770_s3 + $0x64] sm:$0xf0] }
 0x252   : > { %v1558_v46 = vadd.f32 %v1494_v44, %v1296_v25  ;;  %v1559_v40 = vadd.f32 %v1495_v10, %v1297_v50  ;;  %1790 = vperm.xlu2 %2878, %v1724_v57   ;;  %v2704_v25 = vor.u32 %v2796_v26, %v2703_v5  ;;  %v2793_v44 = vld [vmem:[%s4770_s3 + $0x54] sm:$0xf]  ;;  %v2697_v10 = vld [vmem:[%s4770_s3 + $0x58] sm:$0xf0] }
 0x253   : > { %v2700_v54 = vor.u32 %v2793_v44, %v2697_v10  ;;  %v2735_v44 = vld [vmem:[%s4770_s3 + $0xa0] sm:$0xf]  ;;  %v2804_v10 = vld [vmem:[%s4770_s3 + $0xa4] sm:$0xf0] }
 0x256   : > { %v1392_v2 = vpop.permute.xlu1 %1391  ;;  %1835 = vperm.xlu0 %2879, %v1733_v56  }
 0x257   : > { %v1492_v4 = vmul.f32 %v3594_v21, %v1392_v2  ;;  %v1493_v33 = vmul.f32 %v3596_v16, %v1392_v2  ;;  %v1622_v21 = vmax.f32 %v1558_v46, 0.0  ;;  %v1623_v16 = vmax.f32 %v1559_v40, 0.0  ;;  %v2798_v46 = vld [vmem:[%s4770_s3 + $0x74] sm:$0xf0] }
 0x259   : > { %v1556_v23 = vadd.f32 %v1492_v4, %v4021_v8  ;;  %v1557_v37 = vadd.f32 %v1493_v33, %v4024_v9  ;;  %v2660_v8 = vor.u32 %v2783_v14, %v2657_v47  ;;  %v1741_v9 = vld [vmem:[%s4771_s4 + $0xc8] sm:$0xff]  ;;  %v2711_v33 = vld [vmem:[%s4770_s3 + $0x70] sm:$0xf] }
 0x25a   : > { %1875 = vperm.xlu2 %2878, %v1741_v9   ;;  %v2712_v40 = vor.u32 %v2798_v46, %v2711_v33  ;;  %v2800_v47 = vld [vmem:[%s4770_s3 + $0x84] sm:$0xf0]  ;;  %v2797_v9 = vld [vmem:[%s4770_s3 + $0x74] sm:$0xf] }
 0x25b   : > { %v1620_v29 = vmax.f32 %v1556_v23, 0.0  ;;  %v1621_v28 = vmax.f32 %v1557_v37, 0.0  ;;  %v2705_v23 = vld [vmem:[%s4770_s3 + $0x68] sm:$0xf0] }
 0x25c   : > { %2259 = vmatmul.bf16.gmra.mxu2 %v2664_v15  ;;  %2081 = vmatmul.bf16.gmra.mxu0 %v2664_v15  ;;  %v2795_v15 = vld [vmem:[%s4770_s3 + $0x64] sm:$0xf] }
 0x25d   : > { %v1668_v17 = vpack.c.bf16 %v1622_v21, %v1620_v29  ;;  %v1669_v20 = vpack.c.bf16 %v1623_v16, %v1621_v28  ;;  %v2708_v29 = vor.u32 %v2795_v15, %v2705_v23  ;;  %v2719_v16 = vld [vmem:[%s4770_s3 + $0x80] sm:$0xf]  ;;  %v2736_v15 = vor.u32 %v2804_v10, %v2735_v44 }
 0x25f   : > { %2164 = vmatpush.bf16.msra.mxu1 %v1668_v17  ;;  %2342 = vmatpush.bf16.msra.mxu3 %v1669_v20  ;;  %v2720_v20 = vor.u32 %v2800_v47, %v2719_v16  ;;  %v1732_v16 = vld [vmem:[%s4771_s4 + $0x80] sm:$0xff] }
 0x261   : > { %v4381_v38 = vpop.permute.xlu1 %1820 }
 0x262   : > { %2165 = vmatmul.bf16.vlgmr.msra.gmra.mxu1 %v2660_v8  ;;  %2343 = vmatmul.bf16.vlgmr.msra.gmra.mxu3 %v2660_v8 }
 0x263   : > { %1860 = vperm.xlu2 %2878, %v1738_v42  }
 0x26b   : > { %1775 = vperm.xlu2 %2878, %v1721_v7  }
 0x26c   : > { %2264 = vmatmul.bf16.gmra.mxu2 %v2672_v63  ;;  %2086 = vmatmul.bf16.gmra.mxu0 %v2672_v63  ;;  %v2716_v63 = vor.u32 %v2797_v9, %v2713_v43 }
 0x270   : > { %v4389_v31 = vpop.permute.xlu1 %1905 }
 0x271   : > { %4961 = vst [vmem:[#allocation18_spill] sm:$0xff] %v4389_v31 }
 0x272   : > { %2170 = vmatmul.bf16.gmra.mxu1 %v2668_v24  ;;  %2348 = vmatmul.bf16.gmra.mxu3 %v2668_v24 }
 0x273   : > { %1760 = vperm.xlu2 %2878, %v1718_v11   ;;  %v4397_v58 = vpop.permute.xlu0 %1900 }
 0x274   : > { %4962 = vst [vmem:[#allocation20_spill] sm:$0xff] %v4397_v58 }
 0x278   : > { %v4399_v61 = vpop.permute.xlu1 %1815 }
 0x27b   : > { %v4407_v3 = vpop.permute.xlu0 %1895  ;;  %1845 = vperm.xlu2 %2878, %v1735_v51   ;;  %v2806_v51 = vld [vmem:[%s4770_s3 + $0xb4] sm:$0xf0] }
 0x27c   : > { %2269 = vmatmul.bf16.gmra.mxu2 %v2680_v55  ;;  %2091 = vmatmul.bf16.gmra.mxu0 %v2680_v55  ;;  %4963 = vst [vmem:[#allocation22_spill] sm:$0xff] %v4407_v3 }
 0x280   : > { %v4417_v18 = vpop.permute.xlu1 %1800 }
 0x282   : > { %2175 = vmatmul.bf16.gmra.mxu1 %v2676_v22  ;;  %2353 = vmatmul.bf16.gmra.mxu3 %v2676_v22 }
 0x283   : > { %1830 = vperm.xlu2 %2878, %v1732_v16  }
 0x284   : > { %v4419_v0 = vpop.permute.xlu0 %1880 }
 0x285   : > { %4964 = vst [vmem:[#allocation23_spill] sm:$0xff] %v4419_v0 }
 0x288   : > { %v4429_v45 = vpop.permute.xlu1 %1885 }
 0x289   : > { %4965 = vst [vmem:[#allocation29_spill] sm:$0xff] %v4429_v45 }
 0x28c   : > { %2274 = vmatmul.bf16.gmra.mxu2 %v2688_v6  ;;  %2096 = vmatmul.bf16.gmra.mxu0 %v2688_v6  ;;  %v4415_v39 = vpop.permute.xlu2 %1825  ;;  %v4431_v50 = vpop.permute.xlu0 %1795 }
 0x290   : > { %v4441_v2 = vpop.permute.xlu1 %1870 }
 0x291   : > { %4967 = vst [vmem:[#allocation31_spill] sm:$0xff] %v4441_v2 }
 0x292   : > { %2180 = vmatmul.bf16.gmra.mxu1 %v2684_v35  ;;  %2358 = vmatmul.bf16.gmra.mxu3 %v2684_v35 }
 0x294   : > { %v4427_v30 = vpop.permute.xlu2 %1810  ;;  %v4443_v4 = vpop.permute.xlu0 %1780 }
 0x298   : > { %v4459_v37 = vpop.permute.xlu1 %1785 }
 0x29c   : > { %2279 = vmatmul.bf16.gmra.mxu2 %v2696_v13  ;;  %2101 = vmatmul.bf16.gmra.mxu0 %v2696_v13  ;;  %v4439_v62 = vpop.permute.xlu2 %1890 }
 0x29d   : > { %4966 = vst [vmem:[#allocation30_spill] sm:$0xff] %v4439_v62 }
 0x2a2   : > { %2185 = vmatmul.bf16.gmra.mxu1 %v2692_v52  ;;  %2363 = vmatmul.bf16.gmra.mxu3 %v2692_v52  ;;  %v4465_v28 = vpop.permute.xlu1 %1770 }
 0x2a4   : > { %v4451_v57 = vpop.permute.xlu2 %1805 }
 0x2a6   : > { %v4461_v14 = vpop.permute.xlu0 %1865 }
 0x2a7   : > { %4968 = vst [vmem:[#allocation32_spill] sm:$0xff] %v4461_v14 }
 0x2aa   : > { %v4483_v42 = vpop.permute.xlu1 %1855 }
 0x2ac   : > { %2284 = vmatmul.bf16.gmra.mxu2 %v2704_v25  ;;  %2106 = vmatmul.bf16.gmra.mxu0 %v2704_v25  ;;  %v4463_v21 = vpop.permute.xlu2 %1790 }
 0x2ae   : > { %v4473_v17 = vpop.permute.xlu0 %1850 }
 0x2b2   : > { %2190 = vmatmul.bf16.gmra.mxu1 %v2700_v54  ;;  %2368 = vmatmul.bf16.gmra.mxu3 %v2700_v54  ;;  %v4498_v41 = vpop.permute.xlu1 %1840 }
 0x2b4   : > { %v4481_v60 = vpop.permute.xlu2 %1875 }
 0x2b5   : > { %4969 = vst [vmem:[#allocation33_spill] sm:$0xff] %v4481_v60 }
 0x2b6   : > { %v4488_v24 = vpop.permute.xlu0 %1765 }
 0x2ba   : > { %v1756_v5 = vpop.permute.xlu1 %1755 }
 0x2bc   : > { %2289 = vmatmul.bf16.gmra.mxu2 %v2712_v40  ;;  %2111 = vmatmul.bf16.gmra.mxu0 %v2712_v40 }
 0x2bd   : > { %v4496_v55 = vpop.permute.xlu2 %1860 }
 0x2c0   : > { %v1751_v6 = vpop.permute.xlu0 %1750 }
 0x2c2   : > { %2195 = vmatmul.bf16.gmra.mxu1 %v2708_v29  ;;  %2373 = vmatmul.bf16.gmra.mxu3 %v2708_v29 }
 0x2c5   : > { %v4506_v13 = vpop.permute.xlu2 %1775 }
 0x2c9   : > { %v2077_v8 = vpop.f32.mrf.mxu0 }
 0x2ca   : > { %v2078_v59 = vadd.f32 %v2077_v8, %v1751_v6  ;;  %v2729_v8 = vld [vmem:[%s4770_s3 + $0x98] sm:$0xf0] }
 0x2cc   : > { %2294 = vmatmul.bf16.gmra.mxu2 %v2720_v20  ;;  %2116 = vmatmul.bf16.gmra.mxu0 %v2720_v20  ;;  %v2801_v20 = vld [vmem:[%s4770_s3 + $0x94] sm:$0xf] }
 0x2cd   : > { %v1761_v9 = vpop.permute.xlu2 %1760  ;;  %v2732_v12 = vor.u32 %v2801_v20, %v2729_v8 }
 0x2cf   : > { %v2255_v32 = vpop.f32.mrf.mxu2 }
 0x2d0   : > { %v2256_v52 = vadd.f32 %v2255_v32, %v1751_v6 }
 0x2d1   : > { %v2079_v7 = vpop.f32.mrf.mxu0 }
 0x2d2   : > { %2200 = vmatmul.bf16.gmra.mxu1 %v2716_v63  ;;  %2378 = vmatmul.bf16.gmra.mxu3 %v2716_v63  ;;  %v2080_v26 = vadd.f32 %v2079_v7, %v1756_v5 }
 0x2d7   : > { %v2257_v11 = vpop.f32.mrf.mxu2 }
 0x2d8   : > { %v2258_v43 = vadd.f32 %v2257_v11, %v1756_v5 }
 0x2d9   : > { %v2082_v22 = vpop.f32.mrf.mxu0 }
 0x2da   : > { %v2083_v63 = vadd.f32 %v2082_v22, %v1761_v9 }
 0x2dc   : > { %2299 = vmatmul.bf16.gmra.mxu2 %v2728_v49  ;;  %2121 = vmatmul.bf16.gmra.mxu0 %v2728_v49 }
 0x2df   : > { %v2166_v35 = vpop.f32.mrf.mxu1  ;;  %v2260_v36 = vpop.f32.mrf.mxu2 }
 0x2e0   : > { %v2167_v1 = vadd.f32 %v2166_v35, %v2078_v59 }
 0x2e1   : > { %v2084_v34 = vpop.f32.mrf.mxu0 }
 0x2e2   : > { %2205 = vmatmul.bf16.gmra.mxu1 %v2724_v53  ;;  %2383 = vmatmul.bf16.gmra.mxu3 %v2724_v53  ;;  %v2424_v23 = vmax.f32 %v2167_v1, 0.0  ;;  %v2261_v53 = vadd.f32 %v2260_v36, %v1761_v9  ;;  %v2085_v11 = vadd.f32 %v2084_v34, %v4488_v24  ;;  %v2743_v1 = vld [vmem:[%s4770_s3 + $0xb0] sm:$0xf]  ;;  %v2803_v34 = vld [vmem:[%s4770_s3 + $0xa4] sm:$0xf] }
 0x2e3   : > { %v2744_v44 = vor.u32 %v2806_v51, %v2743_v1  ;;  %v2745_v51 = vld [vmem:[%s4770_s3 + $0xb8] sm:$0xf0] }
 0x2e5   : > { %v2344_v25 = vpop.f32.mrf.mxu3 }
 0x2e6   : > { %v2345_v54 = vadd.f32 %v2344_v25, %v2256_v52 }
 0x2e7   : > { %v2168_v33 = vpop.f32.mrf.mxu1  ;;  %v2262_v46 = vpop.f32.mrf.mxu2 }
 0x2e8   : > { %v2169_v40 = vadd.f32 %v2168_v33, %v2080_v26  ;;  %v2425_v27 = vmax.f32 %v2345_v54, 0.0  ;;  %v2737_v33 = vld [vmem:[%s4770_s3 + $0xa8] sm:$0xf0] }
 0x2e9   : > { %v2087_v29 = vpop.f32.mrf.mxu0  ;;  %v2740_v20 = vor.u32 %v2803_v34, %v2737_v33 }
 0x2ea   : > { %v2426_v47 = vmax.f32 %v2169_v40, 0.0  ;;  %v2263_v40 = vadd.f32 %v2262_v46, %v4488_v24 }
 0x2ec   : > { %2304 = vmatmul.bf16.gmra.mxu2 %v2736_v15  ;;  %2126 = vmatmul.bf16.gmra.mxu0 %v2736_v15  ;;  %v4526_v32 = vpack.c.bf16 %v2426_v47, %v2424_v23  ;;  %v2088_v15 = vadd.f32 %v2087_v29, %v4465_v28 }
 0x2ed   : > { %v2346_v56 = vpop.f32.mrf.mxu3 }
 0x2ee   : > { %v2347_v7 = vadd.f32 %v2346_v56, %v2258_v43 }
 0x2ef   : > { %v2171_v19 = vpop.f32.mrf.mxu1  ;;  %v2265_v49 = vpop.f32.mrf.mxu2 }
 0x2f0   : > { %v2427_v48 = vmax.f32 %v2347_v7, 0.0  ;;  %v2172_v6 = vadd.f32 %v2171_v19, %v2083_v63  ;;  %v2751_v19 = vld [vmem:[%s4770_s3 + $0xc0] sm:$0xf] }
 0x2f1   : > { %v2089_v59 = vpop.f32.mrf.mxu0 }
 0x2f2   : > { %2210 = vmatmul.bf16.gmra.mxu1 %v2732_v12  ;;  %2388 = vmatmul.bf16.gmra.mxu3 %v2732_v12  ;;  %v4528_v35 = vpack.c.bf16 %v2427_v48, %v2425_v27  ;;  %v2428_v10 = vmax.f32 %v2172_v6, 0.0  ;;  %v2266_v12 = vadd.f32 %v2265_v49, %v4465_v28  ;;  %v2090_v46 = vadd.f32 %v2089_v59, %v4506_v13  ;;  %v2808_v27 = vld [vmem:[%s4770_s3 + $0xc4] sm:$0xf0]  ;;  %v2805_v59 = vld [vmem:[%s4770_s3 + $0xb4] sm:$0xf] }
 0x2f3   : > { %v2752_v49 = vor.u32 %v2808_v27, %v2751_v19  ;;  %v2807_v27 = vld [vmem:[%s4770_s3 + $0xc4] sm:$0xf] }
 0x2f5   : > { %v2349_v22 = vpop.f32.mrf.mxu3 }
 0x2f6   : > { %v2350_v52 = vadd.f32 %v2349_v22, %v2261_v53 }
 0x2f7   : > { %v2173_v5 = vpop.f32.mrf.mxu1  ;;  %v2267_v26 = vpop.f32.mrf.mxu2 }
 0x2f8   : > { %v2174_v25 = vadd.f32 %v2173_v5, %v2085_v11  ;;  %v2429_v43 = vmax.f32 %v2350_v52, 0.0  ;;  %v2268_v52 = vadd.f32 %v2267_v26, %v4506_v13 }
 0x2f9   : > { %v2092_v36 = vpop.f32.mrf.mxu0 }
 0x2fa   : > { %v2430_v54 = vmax.f32 %v2174_v25, 0.0  ;;  %v2093_v5 = vadd.f32 %v2092_v36, %v4443_v4 }
 0x2fc   : > { %2309 = vmatmul.bf16.gmra.mxu2 %v2744_v44  ;;  %2131 = vmatmul.bf16.gmra.mxu0 %v2744_v44  ;;  %v4545_v23 = vpack.c.bf16 %v2430_v54, %v2428_v10  ;;  %v2748_v54 = vor.u32 %v2805_v59, %v2745_v51 }
 0x2fd   : > { %v2351_v16 = vpop.f32.mrf.mxu3 }
 0x2fe   : > { %v2352_v47 = vadd.f32 %v2351_v16, %v2263_v40 }
 0x2ff   : > { %v2176_v8 = vpop.f32.mrf.mxu1  ;;  %v2270_v9 = vpop.f32.mrf.mxu2 }
 0x300   : > { %v2431_v63 = vmax.f32 %v2352_v47, 0.0  ;;  %v2177_v56 = vadd.f32 %v2176_v8, %v2088_v15  ;;  %v2759_v8 = vld [vmem:[%s4770_s3 + $0xd0] sm:$0xf] }
 0x301   : > { %v2094_v7 = vpop.f32.mrf.mxu0 }
 0x302   : > { %2215 = vmatmul.bf16.gmra.mxu1 %v2740_v20  ;;  %2393 = vmatmul.bf16.gmra.mxu3 %v2740_v20  ;;  %v4548_v24 = vpack.c.bf16 %v2431_v63, %v2429_v43  ;;  %v2432_v11 = vmax.f32 %v2177_v56, 0.0  ;;  %v2271_v20 = vadd.f32 %v2270_v9, %v4443_v4  ;;  %v2095_v26 = vadd.f32 %v2094_v7, %v4459_v37  ;;  %v2810_v43 = vld [vmem:[%s4770_s3 + $0xd4] sm:$0xf0]  ;;  %v2521_v63 = vld [vmem:[%s4773_s6] sm:$0xff] }
 0x303   : > { %2524 = vperm.xlu1 %2877, %v2521_v63  }
 0x305   : > { %v2354_v29 = vpop.f32.mrf.mxu3 }
 0x306   : > { %v2355_v48 = vadd.f32 %v2354_v29, %v2266_v12 }
 0x307   : > { %v2178_v6 = vpop.f32.mrf.mxu1  ;;  %v2272_v53 = vpop.f32.mrf.mxu2 }
 0x308   : > { %v2179_v28 = vadd.f32 %v2178_v6, %v2090_v46  ;;  %v2433_v40 = vmax.f32 %v2355_v48, 0.0  ;;  %v2760_v46 = vor.u32 %v2810_v43, %v2759_v8  ;;  %v2753_v48 = vld [vmem:[%s4770_s3 + $0xc8] sm:$0xf0]  ;;  %v2273_v6 = vadd.f32 %v2272_v53, %v4459_v37 }
 0x309   : > { %v2097_v22 = vpop.f32.mrf.mxu0  ;;  %v2756_v59 = vor.u32 %v2807_v27, %v2753_v48 }
 0x30a   : > { %v2434_v1 = vmax.f32 %v2179_v28, 0.0 }
 0x30c   : > { %2314 = vmatmul.bf16.gmra.mxu2 %v2752_v49  ;;  %2136 = vmatmul.bf16.gmra.mxu0 %v2752_v49  ;;  %v4565_v25 = vpack.c.bf16 %v2434_v1, %v2432_v11  ;;  %v2098_v11 = vadd.f32 %v2097_v22, %v4463_v21 }
 0x30d   : > { %v2356_v44 = vpop.f32.mrf.mxu3 }
 0x30e   : > { %v2357_v10 = vadd.f32 %v2356_v44, %v2268_v52 }
 0x30f   : > { %v2181_v34 = vpop.f32.mrf.mxu1  ;;  %v2275_v33 = vpop.f32.mrf.mxu2 }
 0x310   : > { %v2435_v15 = vmax.f32 %v2357_v10, 0.0  ;;  %v2182_v16 = vadd.f32 %v2181_v34, %v2093_v5  ;;  %v2276_v37 = vadd.f32 %v2275_v33, %v4463_v21  ;;  %v2767_v34 = vld [vmem:[%s4770_s3 + $0xe0] sm:$0xf] }
 0x311   : > { %v4567_v47 = vpop.f32.mrf.mxu0 }
 0x312   : > { %2220 = vmatmul.bf16.gmra.mxu1 %v2748_v54  ;;  %2398 = vmatmul.bf16.gmra.mxu3 %v2748_v54  ;;  %v4570_v13 = vpack.c.bf16 %v2435_v15, %v2433_v40  ;;  %v2436_v12 = vmax.f32 %v2182_v16, 0.0  ;;  %v2812_v40 = vld [vmem:[%s4770_s3 + $0xe4] sm:$0xf0] }
 0x313   : > { %v2768_v21 = vor.u32 %v2812_v40, %v2767_v34 }
 0x315   : > { %v2359_v36 = vpop.f32.mrf.mxu3 }
 0x316   : > { %v2360_v4 = vadd.f32 %v2359_v36, %v2271_v20  ;;  %v2761_v36 = vld [vmem:[%s4770_s3 + $0xd8] sm:$0xf0] }
 0x317   : > { %v2183_v9 = vpop.f32.mrf.mxu1  ;;  %v4582_v56 = vpop.f32.mrf.mxu2 }
 0x318   : > { %v2184_v7 = vadd.f32 %v2183_v9, %v2095_v26  ;;  %v2437_v5 = vmax.f32 %v2360_v4, 0.0  ;;  %v2809_v26 = vld [vmem:[%s4770_s3 + $0xd4] sm:$0xf] }
 0x319   : > { %v4584_v29 = vpop.f32.mrf.mxu0  ;;  %v2764_v43 = vor.u32 %v2809_v26, %v2761_v36  ;;  %v2777_v26 = vld [vmem:[%s4770_s3 + $0xf8] sm:$0xf0] }
 0x31a   : > { %v2438_v19 = vmax.f32 %v2184_v7, 0.0  ;;  %v2775_v7 = vld [vmem:[%s4770_s3 + $0xf0] sm:$0xf] }
 0x31c   : > { %2319 = vmatmul.bf16.gmra.mxu2 %v2760_v46  ;;  %2141 = vmatmul.bf16.gmra.mxu0 %v2760_v46  ;;  %v4594_v28 = vpack.c.bf16 %v2438_v19, %v2436_v12  ;;  %v2814_v46 = vld [vmem:[%s4770_s3 + $0xf4] sm:$0xf0] }
 0x31d   : > { %v2361_v49 = vpop.f32.mrf.mxu3  ;;  %v2776_v48 = vor.u32 %v2814_v46, %v2775_v7 }
 0x31e   : > { %v2362_v1 = vadd.f32 %v2361_v49, %v2273_v6  ;;  %v2769_v49 = vld [vmem:[%s4770_s3 + $0xe8] sm:$0xf0] }
 0x31f   : > { %v2186_v51 = vpop.f32.mrf.mxu1  ;;  %v4596_v52 = vpop.f32.mrf.mxu2 }
 0x320   : > { %v2439_v44 = vmax.f32 %v2362_v1, 0.0  ;;  %v4598_v10 = vadd.f32 %v2186_v51, %v2098_v11  ;;  %v2811_v11 = vld [vmem:[%s4770_s3 + $0xe4] sm:$0xf] }
 0x321   : > { %v4600_v54 = vpop.f32.mrf.mxu0 }
 0x322   : > { %2225 = vmatmul.bf16.gmra.mxu1 %v2756_v59  ;;  %2403 = vmatmul.bf16.gmra.mxu3 %v2756_v59  ;;  %v4603_v53 = vpack.c.bf16 %v2439_v44, %v2437_v5  ;;  %v2772_v59 = vor.u32 %v2811_v11, %v2769_v49  ;;  %v4648_v11 = vpop.permute.xlu2 %1845 }
 0x325   : > { %v2364_v22 = vpop.f32.mrf.mxu3 }
 0x326   : > { %v4611_v15 = vadd.f32 %v2364_v22, %v2276_v37 }
 0x327   : > { %v4613_v16 = vpop.f32.mrf.mxu1  ;;  %v4615_v20 = vpop.f32.mrf.mxu2 }
 0x329   : > { %v2107_v33 = vpop.f32.mrf.mxu0 }
 0x32c   : > { %2324 = vmatmul.bf16.gmra.mxu2 %v2768_v21  ;;  %2146 = vmatmul.bf16.gmra.mxu0 %v2768_v21  ;;  %v2813_v21 = vld [vmem:[%s4770_s3 + $0xf4] sm:$0xf] }
 0x32d   : > { %v4623_v8 = vpop.f32.mrf.mxu3 }
 0x32f   : > { %v2191_v63 = vpop.f32.mrf.mxu1  ;;  %v2285_v4 = vpop.f32.mrf.mxu2 }
 0x331   : > { %v2109_v9 = vpop.f32.mrf.mxu0 }
 0x332   : > { %2230 = vmatmul.bf16.gmra.mxu1 %v2764_v43  ;;  %2408 = vmatmul.bf16.gmra.mxu3 %v2764_v43  ;;  %v2780_v43 = vor.u32 %v2813_v21, %v2777_v26  ;;  %v2110_v60 = vadd.f32 %v2109_v9, %v4399_v61  ;;  %v2103_v21 = vadd.f32 %v4584_v29, %v4417_v18 }
 0x333   : > { %v2105_v26 = vadd.f32 %v4600_v54, %v4451_v57  ;;  %v2286_v29 = vadd.f32 %v2285_v4, %v4427_v30 }
 0x335   : > { %v4625_v12 = vpop.f32.mrf.mxu3 }
 0x337   : > { %v2193_v19 = vpop.f32.mrf.mxu1  ;;  %v2287_v27 = vpop.f32.mrf.mxu2 }
 0x338   : > { %v2194_v14 = vadd.f32 %v2193_v19, %v2105_v26 }
 0x339   : > { %v2112_v6 = vpop.f32.mrf.mxu0 }
 0x33a   : > { %v2446_v4 = vmax.f32 %v2194_v14, 0.0 }
 0x33c   : > { %2329 = vmatmul.bf16.gmra.mxu2 %v2776_v48  ;;  %2151 = vmatmul.bf16.gmra.mxu0 %v2776_v48  ;;  %v2113_v48 = vadd.f32 %v2112_v6, %v4381_v38 }
 0x33d   : > { %v4639_v1 = vpop.f32.mrf.mxu3 }
 0x33f   : > { %v2196_v51 = vpop.f32.mrf.mxu1  ;;  %v2290_v5 = vpop.f32.mrf.mxu2 }
 0x341   : > { %v2114_v44 = vpop.f32.mrf.mxu0 }
 0x342   : > { %2235 = vmatmul.bf16.gmra.mxu1 %v2772_v59  ;;  %2413 = vmatmul.bf16.gmra.mxu3 %v2772_v59  ;;  %v2108_v59 = vadd.f32 %v2107_v33, %v4427_v30  ;;  %v2115_v0 = vadd.f32 %v2114_v44, %v4415_v39  ;;  %v2100_v44 = vadd.f32 %v4567_v47, %v4431_v50 }
 0x343   : > { %v2281_v47 = vadd.f32 %v4596_v52, %v4417_v18 }
 0x344   : > { %v2197_v6 = vadd.f32 %v2196_v51, %v2108_v59  ;;  %v2288_v51 = vadd.f32 %v2287_v27, %v4399_v61  ;;  %v2283_v61 = vadd.f32 %v4615_v20, %v4451_v57  ;;  %v2278_v57 = vadd.f32 %v4582_v56, %v4431_v50  ;;  %v1836_v20 = vpop.permute.xlu0 %1835 }
 0x345   : > { %v2374_v37 = vpop.f32.mrf.mxu3 }
 0x346   : > { %v2448_v54 = vmax.f32 %v2197_v6, 0.0 }
 0x347   : > { %v2198_v22 = vpop.f32.mrf.mxu1  ;;  %v2292_v34 = vpop.f32.mrf.mxu2 }
 0x348   : > { %v2199_v58 = vadd.f32 %v2198_v22, %v2110_v60  ;;  %v2293_v59 = vadd.f32 %v2292_v34, %v4415_v39  ;;  %v1831_v60 = vpop.permute.xlu2 %1830  ;;  %v2375_v39 = vadd.f32 %v2374_v37, %v2286_v29  ;;  %v2370_v37 = vadd.f32 %v4625_v12, %v2281_v47 }
 0x349   : > { %v2117_v40 = vpop.f32.mrf.mxu0 }
 0x34a   : > { %v2450_v22 = vmax.f32 %v2199_v58, 0.0  ;;  %v2449_v6 = vmax.f32 %v2375_v39, 0.0 }
 0x34c   : > { %v2500_v34 = vpack.c.bf16 %v2450_v22, %v2448_v54  ;;  %v2445_v54 = vmax.f32 %v2370_v37, 0.0  ;;  %v2441_v22 = vmax.f32 %v4611_v15, 0.0 }
 0x34d   : > { %v2376_v36 = vpop.f32.mrf.mxu3 }
 0x34f   : > { %v2201_v7 = vpop.f32.mrf.mxu1  ;;  %v2295_v46 = vpop.f32.mrf.mxu2 }
 0x350   : > { %v2202_v45 = vadd.f32 %v2201_v7, %v2113_v48  ;;  %v2192_v7 = vadd.f32 %v2191_v63, %v2103_v21  ;;  %v2377_v63 = vadd.f32 %v2376_v36, %v2288_v51  ;;  %v2296_v18 = vadd.f32 %v2295_v46, %v1831_v60 }
 0x351   : > { %v2119_v49 = vpop.f32.mrf.mxu0  ;;  %v2440_v36 = vmax.f32 %v4598_v10, 0.0 }
 0x352   : > { %2240 = vmatmul.bf16.gmra.mxu1 %v2780_v43  ;;  %2418 = vmatmul.bf16.gmra.mxu3 %v2780_v43  ;;  %v2291_v43 = vadd.f32 %v2290_v5, %v4381_v38  ;;  %v2452_v33 = vmax.f32 %v2202_v45, 0.0  ;;  %v2189_v5 = vadd.f32 %v4613_v16, %v2100_v44  ;;  %v2372_v16 = vadd.f32 %v4639_v1, %v2283_v61 }
 0x353   : > { %v2451_v26 = vmax.f32 %v2377_v63, 0.0  ;;  %v2367_v1 = vadd.f32 %v4623_v8, %v2278_v57 }
 0x354   : > { %v2442_v14 = vmax.f32 %v2189_v5, 0.0 }
 0x355   : > { %v2379_v62 = vpop.f32.mrf.mxu3  ;;  %v2501_v46 = vpack.c.bf16 %v2451_v26, %v2449_v6  ;;  %v2443_v12 = vmax.f32 %v2367_v1, 0.0 }
 0x356   : > { %v2380_v38 = vadd.f32 %v2379_v62, %v2291_v43  ;;  %v2120_v43 = vadd.f32 %v2119_v49, %v1836_v20  ;;  %v2496_v56 = vpack.c.bf16 %v2442_v14, %v2440_v36 }
 0x357   : > { %v2203_v31 = vpop.f32.mrf.mxu1  ;;  %v4657_v3 = vpop.f32.mrf.mxu2  ;;  %v2497_v5 = vpack.c.bf16 %v2443_v12, %v2441_v22 }
 0x358   : > { %v2204_v2 = vadd.f32 %v2203_v31, %v2115_v0  ;;  %v2118_v31 = vadd.f32 %v2117_v40, %v1831_v60  ;;  %v2453_v62 = vmax.f32 %v2380_v38, 0.0  ;;  %v2298_v8 = vadd.f32 %v4657_v3, %v1836_v20 }
 0x359   : > { %v4660_v9 = vpop.f32.mrf.mxu0 }
 0x35a   : > { %v2454_v48 = vmax.f32 %v2204_v2, 0.0  ;;  %v2444_v2 = vmax.f32 %v2192_v7, 0.0  ;;  %v2447_v7 = vmax.f32 %v2372_v16, 0.0  ;;  %v2123_v38 = vadd.f32 %v4660_v9, %v4498_v41  ;;  %v4690_v9 = vld [vmem:[%s4772_s5] sm:$0xff] }
 0x35c   : > { %v2502_v45 = vpack.c.bf16 %v2454_v48, %v2452_v33  ;;  %v2498_v33 = vpack.c.bf16 %v2446_v4, %v2444_v2  ;;  %v2499_v49 = vpack.c.bf16 %v2447_v7, %v2445_v54 }
 0x35d   : > { %v2381_v0 = vpop.f32.mrf.mxu3 }
 0x35e   : > { %v2382_v30 = vadd.f32 %v2381_v0, %v2293_v59  ;;  %2534 = vmatpush.bf16.msrb.mxu0 %v2502_v45 }
 0x35f   : > { %v2206_v19 = vpop.f32.mrf.mxu1  ;;  %v2300_v58 = vpop.f32.mrf.mxu2 }
 0x360   : > { %v2455_v27 = vmax.f32 %v2382_v30, 0.0  ;;  %v2207_v40 = vadd.f32 %v2206_v19, %v2118_v31  ;;  %v2301_v3 = vadd.f32 %v2300_v58, %v4498_v41  ;;  %v2528_v19 = vunpack.c.l.b16 %v4690_v9 }
 0x361   : > { %v2124_v21 = vpop.f32.mrf.mxu0 }
 0x362   : > { %2535 = vmatpush.bf16.msrb.mxu0 %v2500_v34  ;;  %v2503_v52 = vpack.c.bf16 %v2455_v27, %v2453_v62  ;;  %v2456_v51 = vmax.f32 %v2207_v40, 0.0  ;;  %v2530_v34 = vpack.c.b16 %v2528_v19, %v2528_v19 }
 0x364   : > { %2560 = vmatpush.bf16.msrb.mxu2 %v2503_v52 }
 0x365   : > { %v2384_v44 = vpop.f32.mrf.mxu3 }
 0x366   : > { %v2385_v29 = vadd.f32 %v2384_v44, %v2296_v18  ;;  %2536 = vmatpush.bf16.msrb.mxu0 %v2498_v33 }
 0x367   : > { %v2208_v48 = vpop.f32.mrf.mxu1  ;;  %v2302_v10 = vpop.f32.mrf.mxu2 }
 0x368   : > { %v2209_v50 = vadd.f32 %v2208_v48, %v2120_v43  ;;  %2561 = vmatpush.bf16.msrb.mxu2 %v2501_v46  ;;  %v2457_v30 = vmax.f32 %v2385_v29, 0.0 }
 0x369   : > { %v2127_v59 = vpop.f32.mrf.mxu0 }
 0x36a   : > { %v2458_v60 = vmax.f32 %v2209_v50, 0.0  ;;  %2537 = vmatpush.bf16.msrb.mxu0 %v2496_v56 }
 0x36c   : > { %2562 = vmatpush.bf16.msrb.mxu2 %v2499_v49  ;;  %v4682_v45 = vpack.c.bf16 %v2458_v60, %v2456_v51  ;;  %v4970_v49 = vld [vmem:[#allocation32_spill] sm:$0xff] }
 0x36d   : > { %v2386_v31 = vpop.f32.mrf.mxu3 }
 0x36e   : > { %v2387_v0 = vadd.f32 %v2386_v31, %v2298_v8  ;;  %2538 = vmatpush.bf16.msrb.mxu0 %v4594_v28  ;;  %v2125_v28 = vadd.f32 %v2124_v21, %v4648_v11  ;;  %v2303_v21 = vadd.f32 %v2302_v10, %v4648_v11 }
 0x36f   : > { %v2211_v47 = vpop.f32.mrf.mxu1  ;;  %v2305_v63 = vpop.f32.mrf.mxu2 }
 0x370   : > { %v2459_v2 = vmax.f32 %v2387_v0, 0.0  ;;  %v2212_v61 = vadd.f32 %v2211_v47, %v2123_v38  ;;  %2563 = vmatpush.bf16.msrb.mxu2 %v2497_v5 }
 0x371   : > { %v2129_v15 = vpop.f32.mrf.mxu0 }
 0x372   : > { %2539 = vmatpush.bf16.msrb.mxu0 %v4565_v25  ;;  %v4692_v4 = vpack.c.bf16 %v2459_v2, %v2457_v30  ;;  %v2460_v25 = vmax.f32 %v2212_v61, 0.0  ;;  %v4971_v30 = vld [vmem:[#allocation31_spill] sm:$0xff] }
 0x374   : > { %2564 = vmatpush.bf16.msrb.mxu2 %v4603_v53  ;;  %v2128_v53 = vadd.f32 %v2127_v59, %v4473_v17 }
 0x375   : > { %v2389_v39 = vpop.f32.mrf.mxu3 }
 0x376   : > { %v2390_v62 = vadd.f32 %v2389_v39, %v2301_v3  ;;  %2540 = vmatpush.bf16.msrb.mxu0 %v4545_v23 }
 0x377   : > { %v2213_v41 = vpop.f32.mrf.mxu1  ;;  %v2307_v58 = vpop.f32.mrf.mxu2 }
 0x378   : > { %v2214_v27 = vadd.f32 %v2213_v41, %v2125_v28  ;;  %2565 = vmatpush.bf16.msrb.mxu2 %v4570_v13  ;;  %v2461_v57 = vmax.f32 %v2390_v62, 0.0  ;;  %v2308_v29 = vadd.f32 %v2307_v58, %v4483_v42 }
 0x379   : > { %v2132_v40 = vpop.f32.mrf.mxu0 }
 0x37a   : > { %v2462_v16 = vmax.f32 %v2214_v27, 0.0  ;;  %2541 = vmatpush.bf16.msrb.mxu0 %v4526_v32  ;;  %v2306_v32 = vadd.f32 %v2305_v63, %v4473_v17  ;;  %v2133_v46 = vadd.f32 %v2132_v40, %v4496_v55 }
 0x37c   : > { %2566 = vmatpush.bf16.msrb.mxu2 %v4548_v24  ;;  %v4703_v26 = vpack.c.bf16 %v2462_v16, %v2460_v25  ;;  %v2130_v24 = vadd.f32 %v2129_v15, %v4483_v42 }
 0x37d   : > { %v2391_v23 = vpop.f32.mrf.mxu3  ;;  %2542 = vmatmul.bf16.vlgmr.msrb.gmra.mxu0 %v2530_v34 }
 0x37e   : > { %v2392_v18 = vadd.f32 %v2391_v23, %v2303_v21 }
 0x37f   : > { %v2216_v52 = vpop.f32.mrf.mxu1  ;;  %v2310_v36 = vpop.f32.mrf.mxu2 }
 0x380   : > { %v2463_v13 = vmax.f32 %v2392_v18, 0.0  ;;  %v2217_v14 = vadd.f32 %v2216_v52, %v2128_v53  ;;  %2567 = vmatpush.bf16.msrb.mxu2 %v4528_v35  ;;  %v2311_v59 = vadd.f32 %v2310_v36, %v4496_v55 }
 0x381   : > { %v2134_v11 = vpop.f32.mrf.mxu0 }
 0x382   : > { %v4707_v20 = vpack.c.bf16 %v2463_v13, %v2461_v57  ;;  %v2464_v33 = vmax.f32 %v2217_v14, 0.0  ;;  %v2135_v22 = vadd.f32 %v2134_v11, %v4970_v49 }
 0x383   : > { %2568 = vmatmul.bf16.vlgmr.msrb.gmra.mxu2 %v2530_v34 }
 0x385   : > { %v2394_v37 = vpop.f32.mrf.mxu3 }
 0x386   : > { %v2395_v6 = vadd.f32 %v2394_v37, %v2306_v32 }
 0x387   : > { %v2218_v43 = vpop.f32.mrf.mxu1  ;;  %v2312_v1 = vpop.f32.mrf.mxu2 }
 0x388   : > { %v2219_v44 = vadd.f32 %v2218_v43, %v2130_v24  ;;  %v2465_v51 = vmax.f32 %v2395_v6, 0.0  ;;  %v2313_v63 = vadd.f32 %v2312_v1, %v4970_v49 }
 0x389   : > { %v2137_v48 = vpop.f32.mrf.mxu0 }
 0x38a   : > { %v2466_v7 = vmax.f32 %v2219_v44, 0.0  ;;  %v2138_v2 = vadd.f32 %v2137_v48, %v4971_v30  ;;  %v4973_v48 = vld [vmem:[#allocation22_spill] sm:$0xff] }
 0x38c   : > { %v4712_v35 = vpack.c.bf16 %v2466_v7, %v2464_v33 }
 0x38d   : > { %v2396_v17 = vpop.f32.mrf.mxu3 }
 0x38e   : > { %v2397_v10 = vadd.f32 %v2396_v17, %v2308_v29  ;;  %v4972_v29 = vld [vmem:[#allocation20_spill] sm:$0xff] }
 0x38f   : > { %v2221_v54 = vpop.f32.mrf.mxu1  ;;  %v2315_v60 = vpop.f32.mrf.mxu2 }
 0x390   : > { %v2467_v50 = vmax.f32 %v2397_v10, 0.0  ;;  %v2222_v56 = vadd.f32 %v2221_v54, %v2133_v46  ;;  %v2316_v58 = vadd.f32 %v2315_v60, %v4971_v30 }
 0x391   : > { %v2139_v31 = vpop.f32.mrf.mxu0 }
 0x392   : > { %v4715_v12 = vpack.c.bf16 %v2467_v50, %v2465_v51  ;;  %v2468_v0 = vmax.f32 %v2222_v56, 0.0  ;;  %v4974_v51 = vld [vmem:[#allocation18_spill] sm:$0xff] }
 0x395   : > { %v2399_v8 = vpop.f32.mrf.mxu3 }
 0x396   : > { %v2400_v42 = vadd.f32 %v2399_v8, %v2311_v59  ;;  %v4975_v59 = vld [vmem:[#allocation30_spill] sm:$0xff]  ;;  %v4976_v8 = vld [vmem:[#allocation23_spill] sm:$0xff] }
 0x397   : > { %v2223_v38 = vpop.f32.mrf.mxu1  ;;  %v4722_v55 = vpop.f32.mrf.mxu2 }
 0x398   : > { %v2224_v5 = vadd.f32 %v2223_v38, %v2135_v22  ;;  %v2469_v39 = vmax.f32 %v2400_v42, 0.0  ;;  %v4977_v38 = vld [vmem:[#allocation29_spill] sm:$0xff] }
 0x399   : > { %v2142_v41 = vpop.f32.mrf.mxu0 }
 0x39a   : > { %v2470_v47 = vmax.f32 %v2224_v5, 0.0  ;;  %v2143_v42 = vadd.f32 %v2142_v41, %v4976_v8 }
 0x39c   : > { %v4720_v61 = vpack.c.bf16 %v2470_v47, %v2468_v0 }
 0x39d   : > { %v2401_v15 = vpop.f32.mrf.mxu3 }
 0x39e   : > { %v2402_v3 = vadd.f32 %v2401_v15, %v2313_v63  ;;  %v4978_v15 = vld [vmem:[#allocation33_spill] sm:$0xff] }
 0x39f   : > { %v2226_v28 = vpop.f32.mrf.mxu1  ;;  %v2320_v16 = vpop.f32.mrf.mxu2 }
 0x3a0   : > { %v2471_v19 = vmax.f32 %v2402_v3, 0.0  ;;  %v4724_v62 = vadd.f32 %v2226_v28, %v2138_v2  ;;  %v2140_v3 = vadd.f32 %v2139_v31, %v4978_v15 }
 0x3a1   : > { %v2144_v21 = vpop.f32.mrf.mxu0 }
 0x3a2   : > { %v4727_v25 = vpack.c.bf16 %v2471_v19, %v2469_v39  ;;  %v2145_v0 = vadd.f32 %v2144_v21, %v4977_v38 }
 0x3a5   : > { %v2404_v27 = vpop.f32.mrf.mxu3 }
 0x3a6   : > { %v4729_v34 = vadd.f32 %v2404_v27, %v2316_v58 }
 0x3a7   : > { %v2228_v40 = vpop.f32.mrf.mxu1  ;;  %v2322_v18 = vpop.f32.mrf.mxu2 }
 0x3a9   : > { %v2147_v36 = vpop.f32.mrf.mxu0 }
 0x3aa   : > { %v2148_v60 = vadd.f32 %v2147_v36, %v4975_v59 }
 0x3ad   : > { %v4731_v53 = vpop.f32.mrf.mxu3 }
 0x3af   : > { %v2231_v23 = vpop.f32.mrf.mxu1  ;;  %v2325_v13 = vpop.f32.mrf.mxu2 }
 0x3b0   : > { %v2326_v21 = vadd.f32 %v2325_v13, %v4975_v59  ;;  %v2472_v13 = vmax.f32 %v4724_v62, 0.0  ;;  %v2473_v62 = vmax.f32 %v4729_v34, 0.0 }
 0x3b1   : > { %v2149_v11 = vpop.f32.mrf.mxu0 }
 0x3b2   : > { %v2150_v10 = vadd.f32 %v2149_v11, %v4973_v48  ;;  %v2232_v11 = vadd.f32 %v2231_v23, %v2143_v42 }
 0x3b5   : > { %v2409_v52 = vpop.f32.mrf.mxu3 }
 0x3b7   : > { %v2233_v57 = vpop.f32.mrf.mxu1  ;;  %v2327_v24 = vpop.f32.mrf.mxu2 }
 0x3b8   : > { %v2234_v28 = vadd.f32 %v2233_v57, %v2145_v0  ;;  %v2328_v39 = vadd.f32 %v2327_v24, %v4973_v48 }
 0x3b9   : > { %v2152_v43 = vpop.f32.mrf.mxu0 }
 0x3ba   : > { %v2153_v46 = vadd.f32 %v2152_v43, %v4972_v29  ;;  %v2478_v31 = vmax.f32 %v2234_v28, 0.0 }
 0x3bd   : > { %v2411_v14 = vpop.f32.mrf.mxu3 }
 0x3bf   : > { %v2236_v32 = vpop.f32.mrf.mxu1  ;;  %v2330_v44 = vpop.f32.mrf.mxu2 }
 0x3c0   : > { %v2237_v47 = vadd.f32 %v2236_v32, %v2148_v60  ;;  %v2331_v63 = vadd.f32 %v2330_v44, %v4972_v29  ;;  %v2229_v44 = vadd.f32 %v2228_v40, %v2140_v3 }
 0x3c1   : > { %v2154_v7 = vpop.f32.mrf.mxu0 }
 0x3c2   : > { %v2155_v50 = vadd.f32 %v2154_v7, %v4974_v51  ;;  %v2474_v40 = vmax.f32 %v2229_v44, 0.0 }
 0x3c5   : > { %v2414_v37 = vpop.f32.mrf.mxu3 }
 0x3c6   : > { %v2415_v57 = vadd.f32 %v2414_v37, %v2326_v21 }
 0x3c7   : > { %v2238_v6 = vpop.f32.mrf.mxu1  ;;  %v2332_v5 = vpop.f32.mrf.mxu2 }
 0x3c8   : > { %v2239_v49 = vadd.f32 %v2238_v6, %v2150_v10  ;;  %v2333_v58 = vadd.f32 %v2332_v5, %v4974_v51  ;;  %v2480_v6 = vmax.f32 %v2237_v47, 0.0 }
 0x3ca   : > { %v2482_v19 = vmax.f32 %v2239_v49, 0.0 }
 0x3cc   : > { %v2516_v29 = vpack.c.bf16 %v2482_v19, %v2480_v6 }
 0x3cd   : > { %v2416_v33 = vpop.f32.mrf.mxu3 }
 0x3ce   : > { %v2417_v32 = vadd.f32 %v2416_v33, %v2328_v39  ;;  %v2318_v33 = vadd.f32 %v4722_v55, %v4978_v15 }
 0x3cf   : > { %v2241_v1 = vpop.f32.mrf.mxu1 }
 0x3d0   : > { %v2242_v54 = vadd.f32 %v2241_v1, %v2153_v46  ;;  %v2323_v1 = vadd.f32 %v2322_v18, %v4977_v38  ;;  %v2321_v46 = vadd.f32 %v2320_v16, %v4976_v8  ;;  %v2483_v23 = vmax.f32 %v2417_v32, 0.0 }
 0x3d1   : > { %v2481_v18 = vmax.f32 %v2415_v57, 0.0  ;;  %v2407_v51 = vadd.f32 %v4731_v53, %v2318_v33  ;;  %v2529_v53 = vunpack.c.h.b16 %v4690_v9 }
 0x3d2   : > { %v2484_v30 = vmax.f32 %v2242_v54, 0.0  ;;  %v2412_v48 = vadd.f32 %v2411_v14, %v2323_v1  ;;  %v2410_v54 = vadd.f32 %v2409_v52, %v2321_v46  ;;  %v2512_v14 = vpack.c.bf16 %v2474_v40, %v2472_v13 }
 0x3d3   : > { %v2517_v16 = vpack.c.bf16 %v2483_v23, %v2481_v18  ;;  %v2475_v59 = vmax.f32 %v2407_v51, 0.0  ;;  %v2531_v52 = vpack.c.b16 %v2529_v53, %v2529_v53 }
 0x3d5   : > { %v2419_v17 = vpop.f32.mrf.mxu3  ;;  %v2513_v55 = vpack.c.bf16 %v2475_v59, %v2473_v62 }
 0x3d6   : > { %v2420_v27 = vadd.f32 %v2419_v17, %v2331_v63  ;;  %v2476_v17 = vmax.f32 %v2232_v11, 0.0 }
 0x3d7   : > { %v2243_v56 = vpop.f32.mrf.mxu1 }
 0x3d8   : > { %v2244_v22 = vadd.f32 %v2243_v56, %v2155_v50  ;;  %v2485_v7 = vmax.f32 %v2420_v27, 0.0  ;;  %v2514_v37 = vpack.c.bf16 %v2478_v31, %v2476_v17  ;;  %v2479_v50 = vmax.f32 %v2412_v48, 0.0 }
 0x3d9   : > { %v2477_v56 = vmax.f32 %v2410_v54, 0.0 }
 0x3da   : > { %v2486_v2 = vmax.f32 %v2244_v22, 0.0 }
 0x3db   : > { %v2515_v60 = vpack.c.bf16 %v2479_v50, %v2477_v56 }
 0x3dc   : > { %v2518_v36 = vpack.c.bf16 %v2486_v2, %v2484_v30 }
 0x3dd   : > { %v2421_v41 = vpop.f32.mrf.mxu3 }
 0x3de   : > { %v2422_v43 = vadd.f32 %v2421_v41, %v2333_v58  ;;  %2547 = vmatpush.bf16.msrb.mxu1 %v2518_v36 }
 0x3e0   : > { %v2487_v24 = vmax.f32 %v2422_v43, 0.0 }
 0x3e2   : > { %2548 = vmatpush.bf16.msrb.mxu1 %v2516_v29  ;;  %v2519_v10 = vpack.c.bf16 %v2487_v24, %v2485_v7 }
 0x3e4   : > { %2573 = vmatpush.bf16.msrb.mxu3 %v2519_v10 }
 0x3e6   : > { %2549 = vmatpush.bf16.msrb.mxu1 %v2514_v37 }
 0x3e8   : > { %2574 = vmatpush.bf16.msrb.mxu3 %v2517_v16 }
 0x3ea   : > { %2550 = vmatpush.bf16.msrb.mxu1 %v2512_v14 }
 0x3ec   : > { %2575 = vmatpush.bf16.msrb.mxu3 %v2515_v60 }
 0x3ee   : > { %2551 = vmatpush.bf16.msrb.mxu1 %v4720_v61 }
 0x3f0   : > { %2576 = vmatpush.bf16.msrb.mxu3 %v2513_v55 }
 0x3f2   : > { %2552 = vmatpush.bf16.msrb.mxu1 %v4712_v35 }
 0x3f4   : > { %2577 = vmatpush.bf16.msrb.mxu3 %v4727_v25  ;;  %v2525_v25 = vpop.permute.xlu1 %2524 }
 0x3f6   : > { %2553 = vmatpush.bf16.msrb.mxu1 %v4703_v26 }
 0x3f8   : > { %2578 = vmatpush.bf16.msrb.mxu3 %v4715_v12 }
 0x3fa   : > { %v2543_v49 = vpop.f32.mrf.mxu0  ;;  %2554 = vmatpush.bf16.msrb.mxu1 %v4682_v45 }
 0x3fb   : > { %v2544_v9 = vadd.f32 %v2543_v49, %v2525_v25 }
 0x3fc   : > { %2579 = vmatpush.bf16.msrb.mxu3 %v4707_v20 }
 0x3fd   : > { %2555 = vmatmul.bf16.vlgmr.msrb.gmra.mxu1 %v2531_v52 }
 0x400   : > { %2580 = vmatpush.bf16.msrb.mxu3 %v4692_v4 }
 0x402   : > { %v2545_v61 = vpop.f32.mrf.mxu0 }
 0x403   : > { %2581 = vmatmul.bf16.vlgmr.msrb.gmra.mxu3 %v2531_v52 }
 0x406   : > { %v2569_v35 = vpop.f32.mrf.mxu2 }
 0x407   : > { %v2570_v22 = vadd.f32 %v2569_v35, %v2525_v25 }
 0x40e   : > { %v2571_v34 = vpop.f32.mrf.mxu2 }
 0x47a   : > { %v2556_v26 = vpop.f32.mrf.mxu1 }
 0x47b   : > { %v2557_v12 = vadd.f32 %v2556_v26, %v2544_v9 }
 0x47d   : > { %2586 = vst [vmem:[%s280_s26] sm:$0xff] %v2557_v12 }
 0x482   : > { %v2558_v45 = vpop.f32.mrf.mxu1 }
 0x486   : > { %v2582_v20 = vpop.f32.mrf.mxu3 }
 0x487   : > { %v2583_v8 = vadd.f32 %v2582_v20, %v2570_v22 }
 0x489   : > { %2587 = vst [vmem:[%s280_s26 + $0x8] sm:$0xff] %v2583_v8 }
 0x48e   : > { %v2584_v4 = vpop.f32.mrf.mxu3 }
 0x48f PF: > { %s17_s24 = sadd.s32 1, %s2899_s24  }
 0x490   : > { %p14_p4 = scmp.ge.s32.totalorder %s17_s24, 4  }
 0x492   :  { %16 = sbr.rel (!%p14_p4) target bundleno = 1 (0x1), region = 78 }

</bundles_post_ra>
